<compile_context>
chip_gen: v5e
topology: v5e:2x2
jax: 0.10.0
libtpu: 0.0.40
codegen_flags: <defaults>
</compile_context>

<pallas_src>
import math
import functools

import jax
import jax.numpy as jnp
from jax.experimental import pallas as pl
from jax.experimental.pallas import tpu as pltpu


# Conservative budgets that fit every generation (v7x has only 64 MiB physical
# VMEM; v5e/v6e have 128 MiB).
_VMEM_LIMIT_BYTES = 48 * 1024 * 1024
# Resident right-operand is double-buffered by the pipeline -> keep a single
# copy <= 12 MiB so 2 buffers + adj tiles + accumulator stay well under budget.
_RESIDENT_RHS_BYTES_CAP = 12 * 1024 * 1024


def _pick_tile(n_pad, candidates):
    for c in candidates:
        if c <= n_pad and n_pad % c == 0:
            return c
    return n_pad


# ---------------------------------------------------------------------------
# Kernel 1: dense projection   out = X @ W + bias_row
# ---------------------------------------------------------------------------
def _project_kernel(x_ref, w_ref, b_ref, o_ref):
    acc = jnp.dot(x_ref[...], w_ref[...], preferred_element_type=jnp.float32)
    o_ref[...] = (acc + b_ref[...]).astype(o_ref.dtype)


def _project(x, weight, bias2d, *, tile_m, out_dtype):
    n, f_in = x.shape
    f_out = weight.shape[1]
    cost = pl.CostEstimate(
        flops=2 * n * f_in * f_out,
        transcendentals=0,
        bytes_accessed=(
            x.size * x.dtype.itemsize
            + weight.size * weight.dtype.itemsize
            + bias2d.size * bias2d.dtype.itemsize
            + n * f_out * jnp.dtype(out_dtype).itemsize
        ),
    )
    return pl.pallas_call(
        _project_kernel,
        out_shape=jax.ShapeDtypeStruct((n, f_out), out_dtype),
        grid_spec=pltpu.PrefetchScalarGridSpec(
            num_scalar_prefetch=0,
            grid=(n // tile_m,),
            in_specs=[
                pl.BlockSpec((tile_m, f_in), lambda i: (i, 0)),
                pl.BlockSpec((f_in, f_out), lambda i: (0, 0)),
                pl.BlockSpec((1, f_out), lambda i: (0, 0)),
            ],
            out_specs=pl.BlockSpec((tile_m, f_out), lambda i: (i, 0)),
        ),
        compiler_params=pltpu.CompilerParams(
            dimension_semantics=("parallel",),
            vmem_limit_bytes=_VMEM_LIMIT_BYTES,
        ),
        cost_estimate=cost,
    )(x, weight, bias2d)


# ---------------------------------------------------------------------------
# Kernel 2: aggregation   out = adj @ rhs + bias_row
#   grid = (row_tiles, k_tiles); f32 accumulator carried over the k axis.
#   Two variants: rhs fully VMEM-resident (fetched once, sliced with pl.ds),
#   or streamed one (tile_k, f) block per grid step.
# ---------------------------------------------------------------------------
def _agg_kernel_resident(tile_k, adj_ref, rhs_ref, b_ref, o_ref, acc_ref):
    j = pl.program_id(1)

    @pl.when(j == 0)
    def _():
        # Fold the bias into the accumulator init (broadcast over rows).
        acc_ref[...] = jnp.zeros_like(acc_ref) + b_ref[...]

    k0 = pl.multiple_of(j * tile_k, tile_k)
    acc_ref[...] += jnp.dot(
        adj_ref[...], rhs_ref[pl.ds(k0, tile_k), :],
        preferred_element_type=jnp.float32,
    )

    @pl.when(j == pl.num_programs(1) - 1)
    def _():
        o_ref[...] = acc_ref[...].astype(o_ref.dtype)


def _agg_kernel_streamed(adj_ref, rhs_ref, b_ref, o_ref, acc_ref):
    j = pl.program_id(1)

    @pl.when(j == 0)
    def _():
        acc_ref[...] = jnp.zeros_like(acc_ref) + b_ref[...]

    acc_ref[...] += jnp.dot(
        adj_ref[...], rhs_ref[...], preferred_element_type=jnp.float32
    )

    @pl.when(j == pl.num_programs(1) - 1)
    def _():
        o_ref[...] = acc_ref[...].astype(o_ref.dtype)


def _aggregate(adj, rhs, bias2d, *, tile_n, tile_k, out_dtype):
    n = adj.shape[0]
    f = rhs.shape[1]
    n_row_tiles = n // tile_n
    n_k_tiles = n // tile_k

    rhs_bytes = rhs.size * rhs.dtype.itemsize
    resident = rhs_bytes <= _RESIDENT_RHS_BYTES_CAP

    if resident:
        kernel = functools.partial(_agg_kernel_resident, tile_k)
        rhs_spec = pl.BlockSpec((n, f), lambda i, j: (0, 0))  # fetched once
        rhs_read_bytes = rhs_bytes
    else:
        kernel = _agg_kernel_streamed
        rhs_spec = pl.BlockSpec((tile_k, f), lambda i, j: (j, 0))
        rhs_read_bytes = n_row_tiles * rhs_bytes  # re-read per row tile

    cost = pl.CostEstimate(
        flops=2 * n * n * f,
        transcendentals=0,
        bytes_accessed=(
            adj.size * adj.dtype.itemsize
            + rhs_read_bytes
            + bias2d.size * bias2d.dtype.itemsize
            + n * f * jnp.dtype(out_dtype).itemsize
        ),
    )

    return pl.pallas_call(
        kernel,
        out_shape=jax.ShapeDtypeStruct((n, f), out_dtype),
        grid_spec=pltpu.PrefetchScalarGridSpec(
            num_scalar_prefetch=0,
            grid=(n_row_tiles, n_k_tiles),
            in_specs=[
                pl.BlockSpec((tile_n, tile_k), lambda i, j: (i, j)),
                rhs_spec,
                pl.BlockSpec((1, f), lambda i, j: (0, 0)),
            ],
            out_specs=pl.BlockSpec((tile_n, f), lambda i, j: (i, 0)),
            scratch_shapes=[pltpu.VMEM((tile_n, f), jnp.float32)],
        ),
        compiler_params=pltpu.CompilerParams(
            # Row tiles are independent -> sharded across TensorCores where the
            # chip has more than one; the contraction axis carries the
            # accumulator -> arbitrary.
            dimension_semantics=("parallel", "arbitrary"),
            vmem_limit_bytes=_VMEM_LIMIT_BYTES,
        ),
        cost_estimate=cost,
    )(adj, rhs, bias2d)


# ---------------------------------------------------------------------------
# Forward pass: output = adj @ (x @ W) + bias     (entirely jitted)
# ---------------------------------------------------------------------------
@jax.jit
def graph_convolution(x, adj, weight, bias=None):
    n, f_in = x.shape
    f_out = weight.shape[1]

    if bias is None:
        bias = jnp.zeros((f_out,), jnp.float32)
    bias2d = bias.reshape(1, f_out).astype(jnp.float32)

    # Pad the node dimension to a tiling-friendly multiple of 256.
    n_pad = ((n + 255) // 256) * 256
    pad = n_pad - n
    x_p = jnp.pad(x, ((0, pad), (0, 0))) if pad else x
    adj_p = jnp.pad(adj, ((0, pad), (0, pad))) if pad else adj

    # bf16 is the native MXU dtype on all generations; f32 accumulation below.
    x_bf = x_p.astype(jnp.bfloat16)
    adj_bf = adj_p.astype(jnp.bfloat16)
    w_bf = weight.astype(jnp.bfloat16)

    tile_n = _pick_tile(n_pad, (1024, 512, 256))
    tile_k = _pick_tile(n_pad, (2048, 1024, 512, 256))
    tile_m = tile_n

    if f_in <= f_out:
        # Reassociate: (adj @ x) @ W + bias. The memory-bound aggregation then
        # streams the narrower F_in-wide operand; bias is added in projection.
        zero_bias_fin = jnp.zeros((1, f_in), jnp.float32)
        h = _aggregate(adj_bf, x_bf, zero_bias_fin,
                       tile_n=tile_n, tile_k=tile_k, out_dtype=jnp.bfloat16)
        out = _project(h, w_bf, bias2d, tile_m=tile_m, out_dtype=jnp.float32)
    else:
        zero_bias_fout = jnp.zeros((1, f_out), jnp.float32)
        support = _project(x_bf, w_bf, zero_bias_fout,
                           tile_m=tile_m, out_dtype=jnp.bfloat16)
        out = _aggregate(adj_bf, support, bias2d,
                         tile_n=tile_n, tile_k=tile_k, out_dtype=jnp.float32)

    return out[:n]


def init_params(key, in_features, out_features):
    """Deterministic re-implementation of GraphConvolution.reset_parameters."""
    stdv = 1.0 / math.sqrt(out_features)
    kw, kb = jax.random.split(key)
    weight = jax.random.uniform(
        kw, (in_features, out_features), jnp.float32, minval=-stdv, maxval=stdv
    )
    bias = jax.random.uniform(
        kb, (out_features,), jnp.float32, minval=-stdv, maxval=stdv
    )
    return weight, bias


if __name__ == "__main__":
    # Small multi-tile shapes: N nodes, F_in -> F_out features.
    N, F_IN, F_OUT = 512, 64, 128

    key = jax.random.PRNGKey(0)
    k_x, k_adj, k_param = jax.random.split(key, 3)

    x = jax.random.normal(k_x, (N, F_IN), jnp.float32)

    # Dense row-normalized adjacency standing in for torch.spmm's sparse adj.
    adj_raw = (jax.random.uniform(k_adj, (N, N)) < 0.05).astype(jnp.float32)
    adj_raw = adj_raw + jnp.eye(N, dtype=jnp.float32)  # self loops
    adj = adj_raw / jnp.sum(adj_raw, axis=1, keepdims=True)

    weight, bias = init_params(k_param, F_IN, F_OUT)

    out = graph_convolution(x, adj, weight, bias)
    out = jax.block_until_ready(out)

    # Reference check against plain JAX (f32); kernel uses bf16 operands with
    # f32 accumulation, so a correspondingly loose tolerance is used.
    ref = adj @ (x @ weight) + bias
    assert out.shape == (N, F_OUT)
    max_err = float(jnp.max(jnp.abs(out - ref)))
    assert jnp.allclose(out, ref, atol=3e-2, rtol=3e-2), (
        f"mismatch vs reference (max abs err {max_err})"
    )

    print("KERNEL_OK")
</pallas_src>

<mosaic_0001>
module attributes {stable_mosaic.version = 11 : i64} {
  func.func @_project_kernel(%arg0: i32, %arg1: memref<512x64xbf16, #tpu.memory_space<vmem>>, %arg2: memref<64x128xbf16, #tpu.memory_space<vmem>>, %arg3: memref<1x128xf32, #tpu.memory_space<vmem>>, %arg4: memref<512x128xf32, #tpu.memory_space<vmem>>) attributes {dimension_semantics = [#tpu.dimension_semantics<parallel>], iteration_bounds = array<i64: 1>, scalar_prefetch = 0 : i64, scratch_operands = 0 : i64, tpu.core_type = #tpu.core_type<tc>, window_params = [{transform_indices = @transform_0, window_bounds = array<i64: 512, 64>}, {pipeline_mode = #tpu.pipeline_mode<synchronous>, transform_indices = @transform_1, window_bounds = array<i64: 64, 128>}, {pipeline_mode = #tpu.pipeline_mode<synchronous>, transform_indices = @transform_2, window_bounds = array<i64: 1, 128>}, {transform_indices = @transform_3, window_bounds = array<i64: 512, 128>}]} {
    %c0 = arith.constant 0 : index
    %c0_0 = arith.constant 0 : index
    %0 = vector.load %arg1[%c0, %c0_0] : memref<512x64xbf16, #tpu.memory_space<vmem>>, vector<512x64xbf16>
    %c0_1 = arith.constant 0 : index
    %c0_2 = arith.constant 0 : index
    %1 = vector.load %arg2[%c0_1, %c0_2] : memref<64x128xbf16, #tpu.memory_space<vmem>>, vector<64x128xbf16>
    %cst = arith.constant dense<0.000000e+00> : vector<512x128xf32>
    %2 = tpu.matmul %0, %1, %cst {dimension_numbers = #tpu.dot_dimension_numbers<[1], [0], [0], [1], [0, 0, 1, 1], [], []>} : vector<512x64xbf16>, vector<64x128xbf16>, vector<512x128xf32> -> vector<512x128xf32>
    %c0_3 = arith.constant 0 : index
    %c0_4 = arith.constant 0 : index
    %3 = vector.load %arg3[%c0_3, %c0_4] : memref<1x128xf32, #tpu.memory_space<vmem>>, vector<1x128xf32>
    %4 = vector.broadcast %3 : vector<1x128xf32> to vector<512x128xf32>
    %5 = arith.addf %2, %4 : vector<512x128xf32>
    %c0_5 = arith.constant 0 : index
    %c0_6 = arith.constant 0 : index
    %6 = vector.load %arg4[%c0_5, %c0_6] : memref<512x128xf32, #tpu.memory_space<vmem>>, vector<512x128xf32>
    tpu.vector_store %arg4[%c0_5, %c0_6], %5 {strides = array<i32>} : memref<512x128xf32, #tpu.memory_space<vmem>>, vector<512x128xf32>,
    return
  }
  func.func @transform_0(%arg0: i32) -> (i32, i32) {
    %c0_i32 = arith.constant 0 : i32
    %c0_i32_0 = arith.constant 0 : i32
    return %arg0, %c0_i32 : i32, i32
  }
  func.func @transform_1(%arg0: i32) -> (i32, i32) {
    %c0_i32 = arith.constant 0 : i32
    %c0_i32_0 = arith.constant 0 : i32
    %c0_i32_1 = arith.constant 0 : i32
    return %c0_i32, %c0_i32_0 : i32, i32
  }
  func.func @transform_2(%arg0: i32) -> (i32, i32) {
    %c0_i32 = arith.constant 0 : i32
    %c0_i32_0 = arith.constant 0 : i32
    %c0_i32_1 = arith.constant 0 : i32
    return %c0_i32, %c0_i32_0 : i32, i32
  }
  func.func @transform_3(%arg0: i32) -> (i32, i32) {
    %c0_i32 = arith.constant 0 : i32
    %c0_i32_0 = arith.constant 0 : i32
    return %arg0, %c0_i32 : i32, i32
  }
}

module attributes {stable_mosaic.version = 11 : i64} {
  func.func @_agg_kernel_resident(%arg0: i32, %arg1: i32, %arg2: memref<512x512xbf16, #tpu.memory_space<vmem>>, %arg3: memref<512x64xbf16, #tpu.memory_space<vmem>>, %arg4: memref<1x64xf32, #tpu.memory_space<vmem>>, %arg5: memref<512x64xbf16, #tpu.memory_space<vmem>>, %arg6: memref<512x64xf32, #tpu.memory_space<vmem>>) attributes {dimension_semantics = [#tpu.dimension_semantics<parallel>, #tpu.dimension_semantics<arbitrary>], iteration_bounds = array<i64: 1, 1>, scalar_prefetch = 0 : i64, scratch_operands = 1 : i64, tpu.core_type = #tpu.core_type<tc>, window_params = [{transform_indices = @transform_0, window_bounds = array<i64: 512, 512>}, {pipeline_mode = #tpu.pipeline_mode<synchronous>, transform_indices = @transform_1, window_bounds = array<i64: 512, 64>}, {pipeline_mode = #tpu.pipeline_mode<synchronous>, transform_indices = @transform_2, window_bounds = array<i64: 1, 64>}, {transform_indices = @transform_3, window_bounds = array<i64: 512, 64>}]} {
    %c0_i32 = arith.constant 0 : i32
    %0 = arith.cmpi eq, %arg1, %c0_i32 : i32
    %1 = arith.extui %0 : i1 to i32
    %c0_i32_0 = arith.constant 0 : i32
    %2 = arith.cmpi ne, %1, %c0_i32_0 : i32
    scf.if %2 {
      %cst_9 = arith.constant 0.000000e+00 : f32
      %15 = vector.broadcast %cst_9 : f32 to vector<512x64xf32>
      %c0_10 = arith.constant 0 : index
      %c0_11 = arith.constant 0 : index
      %16 = vector.load %arg4[%c0_10, %c0_11] : memref<1x64xf32, #tpu.memory_space<vmem>>, vector<1x64xf32>
      %17 = vector.broadcast %16 : vector<1x64xf32> to vector<512x64xf32>
      %18 = arith.addf %15, %17 : vector<512x64xf32>
      %c0_12 = arith.constant 0 : index
      %c0_13 = arith.constant 0 : index
      %19 = vector.load %arg6[%c0_12, %c0_13] : memref<512x64xf32, #tpu.memory_space<vmem>>, vector<512x64xf32>
      tpu.vector_store %arg6[%c0_12, %c0_13], %18 {strides = array<i32>} : memref<512x64xf32, #tpu.memory_space<vmem>>, vector<512x64xf32>,
    } else {
    }
    %c512_i32 = arith.constant 512 : i32
    %3 = arith.muli %arg1, %c512_i32 : i32
    %4 = tpu.assume_multiple %3, 512 : i32
    %c0 = arith.constant 0 : index
    %c0_1 = arith.constant 0 : index
    %5 = vector.load %arg6[%c0, %c0_1] : memref<512x64xf32, #tpu.memory_space<vmem>>, vector<512x64xf32>
    %c0_2 = arith.constant 0 : index
    %c0_3 = arith.constant 0 : index
    %6 = vector.load %arg2[%c0_2, %c0_3] : memref<512x512xbf16, #tpu.memory_space<vmem>>, vector<512x512xbf16>
    %7 = arith.index_cast %4 : i32 to index
    %c0_4 = arith.constant 0 : index
    %8 = vector.load %arg3[%7, %c0_4] : memref<512x64xbf16, #tpu.memory_space<vmem>>, vector<512x64xbf16>
    %cst = arith.constant dense<0.000000e+00> : vector<512x64xf32>
    %9 = tpu.matmul %6, %8, %cst {dimension_numbers = #tpu.dot_dimension_numbers<[1], [0], [0], [1], [0, 0, 1, 1], [], []>} : vector<512x512xbf16>, vector<512x64xbf16>, vector<512x64xf32> -> vector<512x64xf32>
    %10 = arith.addf %5, %9 : vector<512x64xf32>
    %c0_5 = arith.constant 0 : index
    %c0_6 = arith.constant 0 : index
    %11 = vector.load %arg6[%c0_5, %c0_6] : memref<512x64xf32, #tpu.memory_space<vmem>>, vector<512x64xf32>
    tpu.vector_store %arg6[%c0_5, %c0_6], %10 {strides = array<i32>} : memref<512x64xf32, #tpu.memory_space<vmem>>, vector<512x64xf32>,
    %c0_i32_7 = arith.constant 0 : i32
    %12 = arith.cmpi eq, %arg1, %c0_i32_7 : i32
    %13 = arith.extui %12 : i1 to i32
    %c0_i32_8 = arith.constant 0 : i32
    %14 = arith.cmpi ne, %13, %c0_i32_8 : i32
    scf.if %14 {
      %c0_9 = arith.constant 0 : index
      %c0_10 = arith.constant 0 : index
      %15 = vector.load %arg6[%c0_9, %c0_10] : memref<512x64xf32, #tpu.memory_space<vmem>>, vector<512x64xf32>
      %16 = arith.truncf %15 : vector<512x64xf32> to vector<512x64xbf16>
      %c0_11 = arith.constant 0 : index
      %c0_12 = arith.constant 0 : index
      %17 = vector.load %arg5[%c0_11, %c0_12] : memref<512x64xbf16, #tpu.memory_space<vmem>>, vector<512x64xbf16>
      tpu.vector_store %arg5[%c0_11, %c0_12], %16 {strides = array<i32>} : memref<512x64xbf16, #tpu.memory_space<vmem>>, vector<512x64xbf16>,
    } else {
    }
    return
  }
  func.func @transform_0(%arg0: i32, %arg1: i32) -> (i32, i32) {
    %c0_i32 = arith.constant 0 : i32
    return %arg0, %arg1 : i32, i32
  }
  func.func @transform_1(%arg0: i32, %arg1: i32) -> (i32, i32) {
    %c0_i32 = arith.constant 0 : i32
    %c0_i32_0 = arith.constant 0 : i32
    %c0_i32_1 = arith.constant 0 : i32
    return %c0_i32, %c0_i32_0 : i32, i32
  }
  func.func @transform_2(%arg0: i32, %arg1: i32) -> (i32, i32) {
    %c0_i32 = arith.constant 0 : i32
    %c0_i32_0 = arith.constant 0 : i32
    %c0_i32_1 = arith.constant 0 : i32
    return %c0_i32, %c0_i32_0 : i32, i32
  }
  func.func @transform_3(%arg0: i32, %arg1: i32) -> (i32, i32) {
    %c0_i32 = arith.constant 0 : i32
    %c0_i32_0 = arith.constant 0 : i32
    return %arg0, %c0_i32 : i32, i32
  }
}

</mosaic_0001>

<bundles_post_ra>
// kernel: graph_convolution.3
= control target key start
LH: loop header
LB: loop body
LE: loop exit
PB: predicated region body
PF: predicated region fallthrough
CT: control target
= control target key end

     0   :  { %s1113_s0 = inlined_call_operand.vmem [shape: bf16[512,64], index: 0, kind: input, shape index: {}]   ;;  %s1114_s1 = inlined_call_operand.vmem [shape: bf16[64,128], index: 1, kind: input, shape index: {}]   ;;  %s1115_s2 = inlined_call_operand.vmem [shape: f32[1,128], index: 2, kind: input, shape index: {}]   ;;  %s1116_s3 = inlined_call_operand.hbm [shape: f32[512,128], index: 3, kind: output, shape index: {}]  }
   0x1   :  { %v835_v0 = vld [vmem:[%s1114_s1 + $0x18] sm:$0xff]  ;;  %v834_v1 = vld [vmem:[%s1114_s1 + $0x10] sm:$0xff] }
   0x2   :  { %377 = vmatpush.bf16.msra.mxu0 %v835_v0  ;;  %836 = vmatpush.bf16.msra.mxu1 %v835_v0 }
   0x3   :  { %837 = vmatpush.bf16.msra.mxu2 %v835_v0  ;;  %838 = vmatpush.bf16.msra.mxu3 %v835_v0 }
   0x4   :  { %8 = vsyncpa [#allocation3], 0  ;;  %v833_v2 = vld [vmem:[%s1114_s1 + $0x8] sm:$0xff]  ;;  %v832_v3 = vld [vmem:[%s1114_s1] sm:$0xff]  ;;  %vm276_vm0 = vcmask 523264   ;;  %s612_s4 = sshll.u32 %s1116_s3, 4  ;;  %s613_s4 = int_to_ptr.hbm [resolvable:$true] %s612_s4 }
   0x5   :  { %v800_v4 = vld [vmem:[%s1113_s0] sm:$0xff]  ;;  %v801_v8 = vld [vmem:[%s1113_s0 + $0x8] sm:$0xff]  ;;  %v802_v12 = vld [vmem:[%s1113_s0 + $0x10] sm:$0xff]  ;;  %s879_s5 = smov 128   ;;  %s880_s6 = smov 8  }
   0x6   :  { %378 = vmatpush.bf16.msra.mxu0 %v834_v1  ;;  %839 = vmatpush.bf16.msra.mxu1 %v834_v1  ;;  %v808_v5 = vld [vmem:[%s1113_s0 + $0x40] sm:$0xff]  ;;  %v809_v9 = vld [vmem:[%s1113_s0 + $0x48] sm:$0xff]  ;;  %v810_v13 = vld [vmem:[%s1113_s0 + $0x50] sm:$0xff] }
   0x7   :  { %840 = vmatpush.bf16.msra.mxu2 %v834_v1  ;;  %841 = vmatpush.bf16.msra.mxu3 %v834_v1  ;;  %v816_v6 = vld [vmem:[%s1113_s0 + $0x80] sm:$0xff]  ;;  %v817_v10 = vld [vmem:[%s1113_s0 + $0x88] sm:$0xff]  ;;  %v818_v14 = vld [vmem:[%s1113_s0 + $0x90] sm:$0xff] }
   0x8   :  { %v824_v7 = vld [vmem:[%s1113_s0 + $0xc0] sm:$0xff]  ;;  %v825_v11 = vld [vmem:[%s1113_s0 + $0xc8] sm:$0xff]  ;;  %v826_v15 = vld [vmem:[%s1113_s0 + $0xd0] sm:$0xff] }
   0x9   :  { %v803_v16 = vld [vmem:[%s1113_s0 + $0x18] sm:$0xff]  ;;  %v804_v20 = vld [vmem:[%s1113_s0 + $0x20] sm:$0xff]  ;;  %v805_v24 = vld [vmem:[%s1113_s0 + $0x28] sm:$0xff] }
   0xa   :  { %379 = vmatpush.bf16.msra.mxu0 %v833_v2  ;;  %842 = vmatpush.bf16.msra.mxu1 %v833_v2  ;;  %v811_v17 = vld [vmem:[%s1113_s0 + $0x58] sm:$0xff]  ;;  %v812_v21 = vld [vmem:[%s1113_s0 + $0x60] sm:$0xff]  ;;  %v813_v25 = vld [vmem:[%s1113_s0 + $0x68] sm:$0xff] }
   0xb   :  { %843 = vmatpush.bf16.msra.mxu2 %v833_v2  ;;  %844 = vmatpush.bf16.msra.mxu3 %v833_v2  ;;  %v819_v18 = vld [vmem:[%s1113_s0 + $0x98] sm:$0xff]  ;;  %v820_v22 = vld [vmem:[%s1113_s0 + $0xa0] sm:$0xff]  ;;  %v821_v26 = vld [vmem:[%s1113_s0 + $0xa8] sm:$0xff] }
   0xc   :  { %v827_v19 = vld [vmem:[%s1113_s0 + $0xd8] sm:$0xff]  ;;  %v828_v23 = vld [vmem:[%s1113_s0 + $0xe0] sm:$0xff]  ;;  %v829_v27 = vld [vmem:[%s1113_s0 + $0xe8] sm:$0xff] }
   0xd   :  { %v806_v28 = vld [vmem:[%s1113_s0 + $0x30] sm:$0xff]  ;;  %v807_v32 = vld [vmem:[%s1113_s0 + $0x38] sm:$0xff]  ;;  %v1044_v36 = vld [vmem:[%s1115_s2] ss:$0 sm:$0xff] }
   0xe   :  { %380 = vmatpush.bf16.msra.mxu0 %v832_v3  ;;  %845 = vmatpush.bf16.msra.mxu1 %v832_v3  ;;  %v814_v29 = vld [vmem:[%s1113_s0 + $0x70] sm:$0xff]  ;;  %v815_v33 = vld [vmem:[%s1113_s0 + $0x78] sm:$0xff] }
   0xf   :  { %846 = vmatpush.bf16.msra.mxu2 %v832_v3  ;;  %847 = vmatpush.bf16.msra.mxu3 %v832_v3  ;;  %v822_v30 = vld [vmem:[%s1113_s0 + $0xb0] sm:$0xff]  ;;  %v823_v34 = vld [vmem:[%s1113_s0 + $0xb8] sm:$0xff] }
  0x10   :  { %v830_v31 = vld [vmem:[%s1113_s0 + $0xf0] sm:$0xff]  ;;  %v831_v35 = vld [vmem:[%s1113_s0 + $0xf8] sm:$0xff]  ;;  %s878_s0 = smov [#allocation2]  }
  0x11   :  { %768 = vmatmul.msk.bf16.vlgmr.msra.gmra.mxu0 %vm276_vm0, %v800_v4  ;;  %776 = vmatmul.msk.bf16.vlgmr.msra.gmra.mxu1 %vm276_vm0, %v808_v5  ;;  %s610_s2 = sshll.u32 %s878_s0, 4  ;;  %s611_s2 = int_to_ptr.vmem [resolvable:$true] %s610_s2 }
  0x12   :  { %784 = vmatmul.msk.bf16.vlgmr.msra.gmra.mxu2 %vm276_vm0, %v816_v6  ;;  %792 = vmatmul.msk.bf16.vlgmr.msra.gmra.mxu3 %vm276_vm0, %v824_v7 }
  0x21   :  { %769 = vmatmul.msk.bf16.gmra.mxu0 %vm276_vm0, %v801_v8  ;;  %777 = vmatmul.msk.bf16.gmra.mxu1 %vm276_vm0, %v809_v9 }
  0x22   :  { %785 = vmatmul.msk.bf16.gmra.mxu2 %vm276_vm0, %v817_v10  ;;  %793 = vmatmul.msk.bf16.gmra.mxu3 %vm276_vm0, %v825_v11 }
  0x31   :  { %770 = vmatmul.msk.bf16.gmra.mxu0 %vm276_vm0, %v802_v12  ;;  %778 = vmatmul.msk.bf16.gmra.mxu1 %vm276_vm0, %v810_v13 }
  0x32   :  { %786 = vmatmul.msk.bf16.gmra.mxu2 %vm276_vm0, %v818_v14  ;;  %794 = vmatmul.msk.bf16.gmra.mxu3 %vm276_vm0, %v826_v15 }
  0x41   :  { %771 = vmatmul.msk.bf16.gmra.mxu0 %vm276_vm0, %v803_v16  ;;  %779 = vmatmul.msk.bf16.gmra.mxu1 %vm276_vm0, %v811_v17 }
  0x42   :  { %787 = vmatmul.msk.bf16.gmra.mxu2 %vm276_vm0, %v819_v18  ;;  %795 = vmatmul.msk.bf16.gmra.mxu3 %vm276_vm0, %v827_v19 }
  0x51   :  { %772 = vmatmul.msk.bf16.gmra.mxu0 %vm276_vm0, %v804_v20  ;;  %780 = vmatmul.msk.bf16.gmra.mxu1 %vm276_vm0, %v812_v21 }
  0x52   :  { %788 = vmatmul.msk.bf16.gmra.mxu2 %vm276_vm0, %v820_v22  ;;  %796 = vmatmul.msk.bf16.gmra.mxu3 %vm276_vm0, %v828_v23 }
  0x61   :  { %773 = vmatmul.msk.bf16.gmra.mxu0 %vm276_vm0, %v805_v24  ;;  %781 = vmatmul.msk.bf16.gmra.mxu1 %vm276_vm0, %v813_v25 }
  0x62   :  { %789 = vmatmul.msk.bf16.gmra.mxu2 %vm276_vm0, %v821_v26  ;;  %797 = vmatmul.msk.bf16.gmra.mxu3 %vm276_vm0, %v829_v27 }
  0x71   :  { %774 = vmatmul.msk.bf16.gmra.mxu0 %vm276_vm0, %v806_v28  ;;  %782 = vmatmul.msk.bf16.gmra.mxu1 %vm276_vm0, %v814_v29 }
  0x72   :  { %790 = vmatmul.msk.bf16.gmra.mxu2 %vm276_vm0, %v822_v30  ;;  %798 = vmatmul.msk.bf16.gmra.mxu3 %vm276_vm0, %v830_v31 }
  0x81   :  { %775 = vmatmul.msk.bf16.gmra.mxu0 %vm276_vm0, %v807_v32  ;;  %783 = vmatmul.msk.bf16.gmra.mxu1 %vm276_vm0, %v815_v33 }
  0x82   :  { %791 = vmatmul.msk.bf16.gmra.mxu2 %vm276_vm0, %v823_v34  ;;  %799 = vmatmul.msk.bf16.gmra.mxu3 %vm276_vm0, %v831_v35 }
  0x8e   :  { %v382_v37 = vpop.f32.mrf.mxu0  ;;  %v422_v38 = vpop.f32.mrf.mxu1 }
  0x8f   :  { %v383_v39 = vadd.f32 %v1044_v36, %v382_v37  ;;  %v423_v40 = vadd.f32 %v1044_v36, %v422_v38 }
  0x91   :  { %542 = vst [vmem:[#allocation2] sm:$0xff] %v383_v39 }
  0x92   :  { %558 = vst [vmem:[#allocation2 + $0x80] sm:$0xff] %v423_v40 }
  0x95   :  { %v462_v41 = vpop.f32.mrf.mxu2  ;;  %v502_v42 = vpop.f32.mrf.mxu3 }
  0x96   :  { %v463_v43 = vadd.f32 %v1044_v36, %v462_v41  ;;  %v503_v44 = vadd.f32 %v1044_v36, %v502_v42  ;;  %v384_v45 = vpop.f32.mrf.mxu0  ;;  %v424_v46 = vpop.f32.mrf.mxu1 }
  0x97   :  { %v385_v47 = vadd.f32 %v1044_v36, %v384_v45  ;;  %v425_v48 = vadd.f32 %v1044_v36, %v424_v46 }
  0x98   :  { %574 = vst [vmem:[#allocation2 + $0x100] sm:$0xff] %v463_v43 }
  0x99   :  { %590 = vst [vmem:[#allocation2 + $0x180] sm:$0xff] %v503_v44 }
  0x9a   :  { %543 = vst [vmem:[#allocation2 + $0x8] sm:$0xff] %v385_v47 }
  0x9b   :  { %559 = vst [vmem:[#allocation2 + $0x88] sm:$0xff] %v425_v48 }
  0x9d   :  { %v464_v49 = vpop.f32.mrf.mxu2  ;;  %v504_v50 = vpop.f32.mrf.mxu3 }
  0x9e   :  { %v465_v51 = vadd.f32 %v1044_v36, %v464_v49  ;;  %v505_v52 = vadd.f32 %v1044_v36, %v504_v50  ;;  %v387_v53 = vpop.f32.mrf.mxu0  ;;  %v427_v54 = vpop.f32.mrf.mxu1 }
  0x9f   :  { %v388_v55 = vadd.f32 %v1044_v36, %v387_v53  ;;  %v428_v56 = vadd.f32 %v1044_v36, %v427_v54 }
  0xa0   :  { %575 = vst [vmem:[#allocation2 + $0x108] sm:$0xff] %v465_v51 }
  0xa1   :  { %591 = vst [vmem:[#allocation2 + $0x188] sm:$0xff] %v505_v52 }
  0xa2   :  { %544 = vst [vmem:[#allocation2 + $0x10] sm:$0xff] %v388_v55 }
  0xa3   :  { %560 = vst [vmem:[#allocation2 + $0x90] sm:$0xff] %v428_v56 }
  0xa5   :  { %v467_v57 = vpop.f32.mrf.mxu2  ;;  %v507_v58 = vpop.f32.mrf.mxu3 }
  0xa6   :  { %v468_v59 = vadd.f32 %v1044_v36, %v467_v57  ;;  %v508_v60 = vadd.f32 %v1044_v36, %v507_v58  ;;  %v389_v61 = vpop.f32.mrf.mxu0  ;;  %v429_v62 = vpop.f32.mrf.mxu1 }
  0xa7   :  { %v390_v63 = vadd.f32 %v1044_v36, %v389_v61  ;;  %v430_v0 = vadd.f32 %v1044_v36, %v429_v62 }
  0xa8   :  { %576 = vst [vmem:[#allocation2 + $0x110] sm:$0xff] %v468_v59 }
  0xa9   :  { %592 = vst [vmem:[#allocation2 + $0x190] sm:$0xff] %v508_v60 }
  0xaa   :  { %545 = vst [vmem:[#allocation2 + $0x18] sm:$0xff] %v390_v63 }
  0xab   :  { %561 = vst [vmem:[#allocation2 + $0x98] sm:$0xff] %v430_v0 }
  0xad   :  { %v469_v1 = vpop.f32.mrf.mxu2  ;;  %v509_v2 = vpop.f32.mrf.mxu3 }
  0xae   :  { %v470_v3 = vadd.f32 %v1044_v36, %v469_v1  ;;  %v510_v4 = vadd.f32 %v1044_v36, %v509_v2  ;;  %v392_v5 = vpop.f32.mrf.mxu0  ;;  %v432_v6 = vpop.f32.mrf.mxu1 }
  0xaf   :  { %v393_v7 = vadd.f32 %v1044_v36, %v392_v5  ;;  %v433_v8 = vadd.f32 %v1044_v36, %v432_v6 }
  0xb0   :  { %577 = vst [vmem:[#allocation2 + $0x118] sm:$0xff] %v470_v3 }
  0xb1   :  { %593 = vst [vmem:[#allocation2 + $0x198] sm:$0xff] %v510_v4 }
  0xb2   :  { %546 = vst [vmem:[#allocation2 + $0x20] sm:$0xff] %v393_v7 }
  0xb3   :  { %562 = vst [vmem:[#allocation2 + $0xa0] sm:$0xff] %v433_v8 }
  0xb5   :  { %v472_v9 = vpop.f32.mrf.mxu2  ;;  %v512_v10 = vpop.f32.mrf.mxu3 }
  0xb6   :  { %v473_v11 = vadd.f32 %v1044_v36, %v472_v9  ;;  %v513_v12 = vadd.f32 %v1044_v36, %v512_v10  ;;  %v394_v13 = vpop.f32.mrf.mxu0  ;;  %v434_v14 = vpop.f32.mrf.mxu1 }
  0xb7   :  { %v395_v15 = vadd.f32 %v1044_v36, %v394_v13  ;;  %v435_v16 = vadd.f32 %v1044_v36, %v434_v14 }
  0xb8   :  { %578 = vst [vmem:[#allocation2 + $0x120] sm:$0xff] %v473_v11 }
  0xb9   :  { %594 = vst [vmem:[#allocation2 + $0x1a0] sm:$0xff] %v513_v12 }
  0xba   :  { %547 = vst [vmem:[#allocation2 + $0x28] sm:$0xff] %v395_v15 }
  0xbb   :  { %563 = vst [vmem:[#allocation2 + $0xa8] sm:$0xff] %v435_v16 }
  0xbd   :  { %v474_v17 = vpop.f32.mrf.mxu2  ;;  %v514_v18 = vpop.f32.mrf.mxu3 }
  0xbe   :  { %v475_v19 = vadd.f32 %v1044_v36, %v474_v17  ;;  %v515_v20 = vadd.f32 %v1044_v36, %v514_v18  ;;  %v397_v21 = vpop.f32.mrf.mxu0  ;;  %v437_v22 = vpop.f32.mrf.mxu1 }
  0xbf   :  { %v398_v23 = vadd.f32 %v1044_v36, %v397_v21  ;;  %v438_v24 = vadd.f32 %v1044_v36, %v437_v22 }
  0xc0   :  { %579 = vst [vmem:[#allocation2 + $0x128] sm:$0xff] %v475_v19 }
  0xc1   :  { %595 = vst [vmem:[#allocation2 + $0x1a8] sm:$0xff] %v515_v20 }
  0xc2   :  { %548 = vst [vmem:[#allocation2 + $0x30] sm:$0xff] %v398_v23 }
  0xc3   :  { %564 = vst [vmem:[#allocation2 + $0xb0] sm:$0xff] %v438_v24 }
  0xc5   :  { %v477_v25 = vpop.f32.mrf.mxu2  ;;  %v517_v26 = vpop.f32.mrf.mxu3 }
  0xc6   :  { %v478_v27 = vadd.f32 %v1044_v36, %v477_v25  ;;  %v518_v28 = vadd.f32 %v1044_v36, %v517_v26  ;;  %v399_v29 = vpop.f32.mrf.mxu0  ;;  %v439_v30 = vpop.f32.mrf.mxu1 }
  0xc7   :  { %v400_v31 = vadd.f32 %v1044_v36, %v399_v29  ;;  %v440_v32 = vadd.f32 %v1044_v36, %v439_v30 }
  0xc8   :  { %580 = vst [vmem:[#allocation2 + $0x130] sm:$0xff] %v478_v27 }
  0xc9   :  { %596 = vst [vmem:[#allocation2 + $0x1b0] sm:$0xff] %v518_v28 }
  0xca   :  { %549 = vst [vmem:[#allocation2 + $0x38] sm:$0xff] %v400_v31 }
  0xcb   :  { %565 = vst [vmem:[#allocation2 + $0xb8] sm:$0xff] %v440_v32 }
  0xcd   :  { %v479_v33 = vpop.f32.mrf.mxu2  ;;  %v519_v34 = vpop.f32.mrf.mxu3 }
  0xce   :  { %v480_v35 = vadd.f32 %v1044_v36, %v479_v33  ;;  %v520_v37 = vadd.f32 %v1044_v36, %v519_v34  ;;  %v402_v38 = vpop.f32.mrf.mxu0  ;;  %v442_v39 = vpop.f32.mrf.mxu1 }
  0xcf   :  { %v403_v40 = vadd.f32 %v1044_v36, %v402_v38  ;;  %v443_v41 = vadd.f32 %v1044_v36, %v442_v39 }
  0xd0   :  { %581 = vst [vmem:[#allocation2 + $0x138] sm:$0xff] %v480_v35 }
  0xd1   :  { %597 = vst [vmem:[#allocation2 + $0x1b8] sm:$0xff] %v520_v37 }
  0xd2   :  { %550 = vst [vmem:[#allocation2 + $0x40] sm:$0xff] %v403_v40 }
  0xd3   :  { %566 = vst [vmem:[#allocation2 + $0xc0] sm:$0xff] %v443_v41 }
  0xd5   :  { %v482_v42 = vpop.f32.mrf.mxu2  ;;  %v522_v43 = vpop.f32.mrf.mxu3 }
  0xd6   :  { %v483_v44 = vadd.f32 %v1044_v36, %v482_v42  ;;  %v523_v45 = vadd.f32 %v1044_v36, %v522_v43  ;;  %v404_v46 = vpop.f32.mrf.mxu0  ;;  %v444_v47 = vpop.f32.mrf.mxu1 }
  0xd7   :  { %v405_v48 = vadd.f32 %v1044_v36, %v404_v46  ;;  %v445_v49 = vadd.f32 %v1044_v36, %v444_v47 }
  0xd8   :  { %582 = vst [vmem:[#allocation2 + $0x140] sm:$0xff] %v483_v44 }
  0xd9   :  { %598 = vst [vmem:[#allocation2 + $0x1c0] sm:$0xff] %v523_v45 }
  0xda   :  { %551 = vst [vmem:[#allocation2 + $0x48] sm:$0xff] %v405_v48 }
  0xdb   :  { %567 = vst [vmem:[#allocation2 + $0xc8] sm:$0xff] %v445_v49 }
  0xdd   :  { %v484_v50 = vpop.f32.mrf.mxu2  ;;  %v524_v51 = vpop.f32.mrf.mxu3 }
  0xde   :  { %v485_v52 = vadd.f32 %v1044_v36, %v484_v50  ;;  %v525_v53 = vadd.f32 %v1044_v36, %v524_v51  ;;  %v407_v54 = vpop.f32.mrf.mxu0  ;;  %v447_v55 = vpop.f32.mrf.mxu1 }
  0xdf   :  { %v408_v56 = vadd.f32 %v1044_v36, %v407_v54  ;;  %v448_v57 = vadd.f32 %v1044_v36, %v447_v55 }
  0xe0   :  { %583 = vst [vmem:[#allocation2 + $0x148] sm:$0xff] %v485_v52 }
  0xe1   :  { %599 = vst [vmem:[#allocation2 + $0x1c8] sm:$0xff] %v525_v53 }
  0xe2   :  { %552 = vst [vmem:[#allocation2 + $0x50] sm:$0xff] %v408_v56 }
  0xe3   :  { %568 = vst [vmem:[#allocation2 + $0xd0] sm:$0xff] %v448_v57 }
  0xe5   :  { %v487_v58 = vpop.f32.mrf.mxu2  ;;  %v527_v59 = vpop.f32.mrf.mxu3 }
  0xe6   :  { %v488_v60 = vadd.f32 %v1044_v36, %v487_v58  ;;  %v528_v61 = vadd.f32 %v1044_v36, %v527_v59  ;;  %v409_v62 = vpop.f32.mrf.mxu0  ;;  %v449_v63 = vpop.f32.mrf.mxu1 }
  0xe7   :  { %v410_v0 = vadd.f32 %v1044_v36, %v409_v62  ;;  %v450_v1 = vadd.f32 %v1044_v36, %v449_v63 }
  0xe8   :  { %584 = vst [vmem:[#allocation2 + $0x150] sm:$0xff] %v488_v60 }
  0xe9   :  { %600 = vst [vmem:[#allocation2 + $0x1d0] sm:$0xff] %v528_v61 }
  0xea   :  { %553 = vst [vmem:[#allocation2 + $0x58] sm:$0xff] %v410_v0 }
  0xeb   :  { %569 = vst [vmem:[#allocation2 + $0xd8] sm:$0xff] %v450_v1 }
  0xed   :  { %v489_v2 = vpop.f32.mrf.mxu2  ;;  %v529_v3 = vpop.f32.mrf.mxu3 }
  0xee   :  { %v490_v4 = vadd.f32 %v1044_v36, %v489_v2  ;;  %v530_v5 = vadd.f32 %v1044_v36, %v529_v3  ;;  %v412_v6 = vpop.f32.mrf.mxu0  ;;  %v452_v7 = vpop.f32.mrf.mxu1 }
  0xef   :  { %v413_v8 = vadd.f32 %v1044_v36, %v412_v6  ;;  %v453_v9 = vadd.f32 %v1044_v36, %v452_v7 }
  0xf0   :  { %585 = vst [vmem:[#allocation2 + $0x158] sm:$0xff] %v490_v4 }
  0xf1   :  { %601 = vst [vmem:[#allocation2 + $0x1d8] sm:$0xff] %v530_v5 }
  0xf2   :  { %554 = vst [vmem:[#allocation2 + $0x60] sm:$0xff] %v413_v8 }
  0xf3   :  { %570 = vst [vmem:[#allocation2 + $0xe0] sm:$0xff] %v453_v9 }
  0xf5   :  { %v492_v10 = vpop.f32.mrf.mxu2  ;;  %v532_v11 = vpop.f32.mrf.mxu3 }
  0xf6   :  { %v493_v12 = vadd.f32 %v1044_v36, %v492_v10  ;;  %v533_v13 = vadd.f32 %v1044_v36, %v532_v11  ;;  %v414_v14 = vpop.f32.mrf.mxu0  ;;  %v454_v15 = vpop.f32.mrf.mxu1 }
  0xf7   :  { %v415_v16 = vadd.f32 %v1044_v36, %v414_v14  ;;  %v455_v17 = vadd.f32 %v1044_v36, %v454_v15 }
  0xf8   :  { %586 = vst [vmem:[#allocation2 + $0x160] sm:$0xff] %v493_v12 }
  0xf9   :  { %602 = vst [vmem:[#allocation2 + $0x1e0] sm:$0xff] %v533_v13 }
  0xfa   :  { %555 = vst [vmem:[#allocation2 + $0x68] sm:$0xff] %v415_v16 }
  0xfb   :  { %571 = vst [vmem:[#allocation2 + $0xe8] sm:$0xff] %v455_v17 }
  0xfd   :  { %v494_v18 = vpop.f32.mrf.mxu2  ;;  %v534_v19 = vpop.f32.mrf.mxu3 }
  0xfe   :  { %v495_v20 = vadd.f32 %v1044_v36, %v494_v18  ;;  %v535_v21 = vadd.f32 %v1044_v36, %v534_v19  ;;  %v417_v22 = vpop.f32.mrf.mxu0  ;;  %v457_v23 = vpop.f32.mrf.mxu1 }
  0xff   :  { %v418_v24 = vadd.f32 %v1044_v36, %v417_v22  ;;  %v458_v25 = vadd.f32 %v1044_v36, %v457_v23 }
 0x100   :  { %587 = vst [vmem:[#allocation2 + $0x168] sm:$0xff] %v495_v20 }
 0x101   :  { %603 = vst [vmem:[#allocation2 + $0x1e8] sm:$0xff] %v535_v21 }
 0x102   :  { %556 = vst [vmem:[#allocation2 + $0x70] sm:$0xff] %v418_v24 }
 0x103   :  { %572 = vst [vmem:[#allocation2 + $0xf0] sm:$0xff] %v458_v25 }
 0x105   :  { %v497_v26 = vpop.f32.mrf.mxu2  ;;  %v537_v27 = vpop.f32.mrf.mxu3 }
 0x106   :  { %v498_v28 = vadd.f32 %v1044_v36, %v497_v26  ;;  %v538_v29 = vadd.f32 %v1044_v36, %v537_v27  ;;  %v419_v30 = vpop.f32.mrf.mxu0  ;;  %v459_v31 = vpop.f32.mrf.mxu1 }
 0x107   :  { %v420_v32 = vadd.f32 %v1044_v36, %v419_v30  ;;  %v460_v33 = vadd.f32 %v1044_v36, %v459_v31 }
 0x108   :  { %588 = vst [vmem:[#allocation2 + $0x170] sm:$0xff] %v498_v28 }
 0x109   :  { %604 = vst [vmem:[#allocation2 + $0x1f0] sm:$0xff] %v538_v29 }
 0x10a   :  { %557 = vst [vmem:[#allocation2 + $0x78] sm:$0xff] %v420_v32 }
 0x10b   :  { %573 = vst [vmem:[#allocation2 + $0xf8] sm:$0xff] %v460_v33 }
 0x10d   :  { %v499_v34 = vpop.f32.mrf.mxu2  ;;  %v539_v35 = vpop.f32.mrf.mxu3 }
 0x10e   :  { %v500_v37 = vadd.f32 %v1044_v36, %v499_v34  ;;  %v540_v38 = vadd.f32 %v1044_v36, %v539_v35 }
 0x110   :  { %589 = vst [vmem:[#allocation2 + $0x178] sm:$0xff] %v500_v37 }
 0x111   :  { %605 = vst [vmem:[#allocation2 + $0x1f8] sm:$0xff] %v540_v38 }
 0x112   :  { %618 = dma.vmem_to_hbm [thread:$0]  %s611_s2, 8192, %s613_s4, [#allocation3], %s879_s5, %s879_s5, %s880_s6  }
 0x113   :  { %876 = dma.done.wait [#allocation3], 8192  }
 0x114   :  { %877 = vsyncadd [#allocation3], 4294959104 }
 0x115   :  { %623 = vsyncpa [#allocation3], 1 }

// kernel: graph_convolution.2
= control target key start
LH: loop header
LB: loop body
LE: loop exit
PB: predicated region body
PF: predicated region fallthrough
CT: control target
= control target key end

     0   :  { %vm23_vm0 = vcmask 523264   ;;  %vm2117_vm1 = vcmask 519168   ;;  %s4326_s1 = inlined_call_operand.vmem [shape: bf16[512,64], index: 1, kind: input, shape index: {}]   ;;  %s4327_s0 = inlined_call_operand.vmem [shape: bf16[512,512], index: 0, kind: input, shape index: {}]   ;;  %s4328_s2 = inlined_call_operand.vmem [shape: f32[1,64], index: 2, kind: input, shape index: {}]   ;;  %s4329_s3 = inlined_call_operand.vmem [shape: bf16[512,64], index: 3, kind: output, shape index: {}]  }
   0x1   :  { %v2963_v0 = vld [vmem:[%s4326_s1 + $0x38] sm:$0xff]  ;;  %v2962_v4 = vld [vmem:[%s4326_s1 + $0x30] sm:$0xff]  ;;  %v2961_v8 = vld [vmem:[%s4326_s1 + $0x28] sm:$0xff] }
   0x2   :  { %v2971_v1 = vld [vmem:[%s4326_s1 + $0x78] sm:$0xff]  ;;  %1181 = vmatpush.bf16.msra.mxu0 %v2963_v0  ;;  %v2970_v5 = vld [vmem:[%s4326_s1 + $0x70] sm:$0xff]  ;;  %v2969_v9 = vld [vmem:[%s4326_s1 + $0x68] sm:$0xff] }
   0x3   :  { %v2979_v2 = vld [vmem:[%s4326_s1 + $0xb8] sm:$0xff]  ;;  %1350 = vmatpush.bf16.msra.mxu1 %v2971_v1  ;;  %v2978_v6 = vld [vmem:[%s4326_s1 + $0xb0] sm:$0xff]  ;;  %v2977_v10 = vld [vmem:[%s4326_s1 + $0xa8] sm:$0xff] }
   0x4   :  { %v2987_v3 = vld [vmem:[%s4326_s1 + $0xf8] sm:$0xff]  ;;  %1519 = vmatpush.bf16.msra.mxu2 %v2979_v2  ;;  %v2986_v7 = vld [vmem:[%s4326_s1 + $0xf0] sm:$0xff]  ;;  %v2985_v11 = vld [vmem:[%s4326_s1 + $0xe8] sm:$0xff] }
   0x5   :  { %1688 = vmatpush.bf16.msra.mxu3 %v2987_v3  ;;  %v2960_v12 = vld [vmem:[%s4326_s1 + $0x20] sm:$0xff]  ;;  %v2959_v16 = vld [vmem:[%s4326_s1 + $0x18] sm:$0xff]  ;;  %v2958_v20 = vld [vmem:[%s4326_s1 + $0x10] sm:$0xff] }
   0x6   :  { %1182 = vmatpush.bf16.msra.mxu0 %v2962_v4  ;;  %v2968_v13 = vld [vmem:[%s4326_s1 + $0x60] sm:$0xff]  ;;  %v2967_v17 = vld [vmem:[%s4326_s1 + $0x58] sm:$0xff]  ;;  %v2966_v21 = vld [vmem:[%s4326_s1 + $0x50] sm:$0xff] }
   0x7   :  { %1351 = vmatpush.bf16.msra.mxu1 %v2970_v5  ;;  %v2976_v14 = vld [vmem:[%s4326_s1 + $0xa0] sm:$0xff]  ;;  %v2975_v18 = vld [vmem:[%s4326_s1 + $0x98] sm:$0xff]  ;;  %v2974_v22 = vld [vmem:[%s4326_s1 + $0x90] sm:$0xff] }
   0x8   :  { %1520 = vmatpush.bf16.msra.mxu2 %v2978_v6  ;;  %v2984_v15 = vld [vmem:[%s4326_s1 + $0xe0] sm:$0xff]  ;;  %v2983_v19 = vld [vmem:[%s4326_s1 + $0xd8] sm:$0xff]  ;;  %v2982_v23 = vld [vmem:[%s4326_s1 + $0xd0] sm:$0xff] }
   0x9   :  { %1689 = vmatpush.bf16.msra.mxu3 %v2986_v7  ;;  %v2957_v24 = vld [vmem:[%s4326_s1 + $0x8] sm:$0xff]  ;;  %v2956_v28 = vld [vmem:[%s4326_s1] sm:$0xff]  ;;  %v2830_v33 = vld [vmem:[%s4327_s0 + $0xc] sm:$0xf0] }
   0xa   :  { %1183 = vmatpush.bf16.msra.mxu0 %v2961_v8  ;;  %v2965_v25 = vld [vmem:[%s4326_s1 + $0x48] sm:$0xff]  ;;  %v2964_v29 = vld [vmem:[%s4326_s1 + $0x40] sm:$0xff]  ;;  %v2192_v35 = vld [vmem:[%s4327_s0 + $0x10] sm:$0xf0] }
   0xb   :  { %1352 = vmatpush.bf16.msra.mxu1 %v2969_v9  ;;  %v2973_v26 = vld [vmem:[%s4326_s1 + $0x88] sm:$0xff]  ;;  %v2972_v30 = vld [vmem:[%s4326_s1 + $0x80] sm:$0xff]  ;;  %v2831_v37 = vld [vmem:[%s4327_s0 + $0x14] sm:$0xf0] }
   0xc   :  { %1521 = vmatpush.bf16.msra.mxu2 %v2977_v10  ;;  %v2981_v27 = vld [vmem:[%s4326_s1 + $0xc8] sm:$0xff]  ;;  %v2980_v31 = vld [vmem:[%s4326_s1 + $0xc0] sm:$0xff]  ;;  %v2200_v39 = vld [vmem:[%s4327_s0 + $0x18] sm:$0xf0] }
   0xd   :  { %1690 = vmatpush.bf16.msra.mxu3 %v2985_v11  ;;  %v2190_v32 = vld [vmem:[%s4327_s0] sm:$0xf]  ;;  %v2828_v34 = vld [vmem:[%s4327_s0 + $0x4] sm:$0xf]  ;;  %v2198_v36 = vld [vmem:[%s4327_s0 + $0x8] sm:$0xf] }
   0xe   :  { %1184 = vmatpush.bf16.msra.mxu0 %v2960_v12  ;;  %v2829_v38 = vld [vmem:[%s4327_s0 + $0xc] sm:$0xf]  ;;  %v2191_v40 = vor.u32 %v2830_v33, %v2190_v32  ;;  %v2195_v41 = vor.u32 %v2828_v34, %v2192_v35  ;;  %v2199_v42 = vor.u32 %v2831_v37, %v2198_v36  ;;  %v2206_v44 = vld [vmem:[%s4327_s0 + $0x20] sm:$0xf]  ;;  %v2834_v45 = vld [vmem:[%s4327_s0 + $0x2c] sm:$0xf0] }
   0xf   :  { %1353 = vmatpush.bf16.msra.mxu1 %v2968_v13  ;;  %v2203_v43 = vor.u32 %v2829_v38, %v2200_v39  ;;  %v2832_v46 = vld [vmem:[%s4327_s0 + $0x24] sm:$0xf]  ;;  %v2208_v47 = vld [vmem:[%s4327_s0 + $0x30] sm:$0xf0]  ;;  %v2214_v48 = vld [vmem:[%s4327_s0 + $0x28] sm:$0xf]  ;;  %v2207_v52 = vor.u32 %v2834_v45, %v2206_v44 }
  0x10   :  { %1522 = vmatpush.bf16.msra.mxu2 %v2976_v14  ;;  %v2835_v49 = vld [vmem:[%s4327_s0 + $0x34] sm:$0xf0]  ;;  %v2833_v50 = vld [vmem:[%s4327_s0 + $0x2c] sm:$0xf]  ;;  %v2216_v51 = vld [vmem:[%s4327_s0 + $0x38] sm:$0xf0]  ;;  %v2211_v53 = vor.u32 %v2832_v46, %v2208_v47 }
  0x11   :  { %1691 = vmatpush.bf16.msra.mxu3 %v2984_v15  ;;  %v2215_v54 = vor.u32 %v2835_v49, %v2214_v48  ;;  %v2219_v55 = vor.u32 %v2833_v50, %v2216_v51  ;;  %v2222_v56 = vld [vmem:[%s4327_s0 + $0x40] sm:$0xf]  ;;  %v2838_v57 = vld [vmem:[%s4327_s0 + $0x4c] sm:$0xf0]  ;;  %v2836_v58 = vld [vmem:[%s4327_s0 + $0x44] sm:$0xf] }
  0x12   :  { %1185 = vmatpush.bf16.msra.mxu0 %v2959_v16  ;;  %v2224_v59 = vld [vmem:[%s4327_s0 + $0x50] sm:$0xf0]  ;;  %v2230_v60 = vld [vmem:[%s4327_s0 + $0x48] sm:$0xf]  ;;  %v2839_v61 = vld [vmem:[%s4327_s0 + $0x54] sm:$0xf0]  ;;  %v2223_v0 = vor.u32 %v2838_v57, %v2222_v56 }
  0x13   :  { %1354 = vmatpush.bf16.msra.mxu1 %v2967_v17  ;;  %v2837_v62 = vld [vmem:[%s4327_s0 + $0x4c] sm:$0xf]  ;;  %v2232_v63 = vld [vmem:[%s4327_s0 + $0x58] sm:$0xf0]  ;;  %v2227_v1 = vor.u32 %v2836_v58, %v2224_v59  ;;  %v2231_v2 = vor.u32 %v2839_v61, %v2230_v60  ;;  %v2238_v4 = vld [vmem:[%s4327_s0 + $0x60] sm:$0xf] }
  0x14   :  { %1523 = vmatpush.bf16.msra.mxu2 %v2975_v18  ;;  %v2235_v3 = vor.u32 %v2837_v62, %v2232_v63  ;;  %v2842_v5 = vld [vmem:[%s4327_s0 + $0x6c] sm:$0xf0]  ;;  %v2840_v6 = vld [vmem:[%s4327_s0 + $0x64] sm:$0xf]  ;;  %v2240_v7 = vld [vmem:[%s4327_s0 + $0x70] sm:$0xf0] }
  0x15   :  { %1692 = vmatpush.bf16.msra.mxu3 %v2983_v19  ;;  %v2246_v8 = vld [vmem:[%s4327_s0 + $0x68] sm:$0xf]  ;;  %v2843_v9 = vld [vmem:[%s4327_s0 + $0x74] sm:$0xf0]  ;;  %v2841_v10 = vld [vmem:[%s4327_s0 + $0x6c] sm:$0xf]  ;;  %v2239_v12 = vor.u32 %v2842_v5, %v2238_v4  ;;  %v2243_v13 = vor.u32 %v2840_v6, %v2240_v7 }
  0x16   :  { %1186 = vmatpush.bf16.msra.mxu0 %v2958_v20  ;;  %v2248_v11 = vld [vmem:[%s4327_s0 + $0x78] sm:$0xf0]  ;;  %v2247_v14 = vor.u32 %v2843_v9, %v2246_v8  ;;  %v2254_v16 = vld [vmem:[%s4327_s0 + $0x80] sm:$0xf]  ;;  %v2846_v17 = vld [vmem:[%s4327_s0 + $0x8c] sm:$0xf0] }
  0x17   :  { %1355 = vmatpush.bf16.msra.mxu1 %v2966_v21  ;;  %v2251_v15 = vor.u32 %v2841_v10, %v2248_v11  ;;  %v2844_v18 = vld [vmem:[%s4327_s0 + $0x84] sm:$0xf]  ;;  %v2256_v19 = vld [vmem:[%s4327_s0 + $0x90] sm:$0xf0]  ;;  %v2262_v20 = vld [vmem:[%s4327_s0 + $0x88] sm:$0xf] }
  0x18   :  { %1524 = vmatpush.bf16.msra.mxu2 %v2974_v22  ;;  %v2847_v21 = vld [vmem:[%s4327_s0 + $0x94] sm:$0xf0]  ;;  %v2845_v22 = vld [vmem:[%s4327_s0 + $0x8c] sm:$0xf]  ;;  %v2278_v32 = vld [vmem:[%s4327_s0 + $0xa8] sm:$0xf] }
  0x19   :  { %1693 = vmatpush.bf16.msra.mxu3 %v2982_v23  ;;  %v2264_v23 = vld [vmem:[%s4327_s0 + $0x98] sm:$0xf0]  ;;  %v2851_v33 = vld [vmem:[%s4327_s0 + $0xb4] sm:$0xf0]  ;;  %v2849_v34 = vld [vmem:[%s4327_s0 + $0xac] sm:$0xf] }
  0x1a   :  { %1187 = vmatpush.bf16.msra.mxu0 %v2957_v24  ;;  %v2255_v24 = vor.u32 %v2846_v17, %v2254_v16  ;;  %v2280_v35 = vld [vmem:[%s4327_s0 + $0xb8] sm:$0xf0]  ;;  %v2279_v38 = vor.u32 %v2851_v33, %v2278_v32  ;;  %v2294_v44 = vld [vmem:[%s4327_s0 + $0xc8] sm:$0xf]  ;;  %v2855_v45 = vld [vmem:[%s4327_s0 + $0xd4] sm:$0xf0] }
  0x1b   :  { %1356 = vmatpush.bf16.msra.mxu1 %v2965_v25  ;;  %v2259_v25 = vor.u32 %v2844_v18, %v2256_v19  ;;  %v2283_v39 = vor.u32 %v2849_v34, %v2280_v35  ;;  %v2853_v46 = vld [vmem:[%s4327_s0 + $0xcc] sm:$0xf]  ;;  %v2296_v47 = vld [vmem:[%s4327_s0 + $0xd8] sm:$0xf0]  ;;  %v2295_v50 = vor.u32 %v2855_v45, %v2294_v44  ;;  %v2304_v56 = vld [vmem:[%s4327_s0 + $0xf0] sm:$0xf0] }
  0x1c   :  { %1525 = vmatpush.bf16.msra.mxu2 %v2973_v26  ;;  %v2263_v26 = vor.u32 %v2847_v21, %v2262_v20  ;;  %v2299_v51 = vor.u32 %v2853_v46, %v2296_v47  ;;  %v2310_v57 = vld [vmem:[%s4327_s0 + $0xe8] sm:$0xf]  ;;  %v2859_v58 = vld [vmem:[%s4327_s0 + $0xf4] sm:$0xf0]  ;;  %v2857_v59 = vld [vmem:[%s4327_s0 + $0xec] sm:$0xf] }
  0x1d   :  { %1694 = vmatpush.bf16.msra.mxu3 %v2981_v27  ;;  %v2267_v27 = vor.u32 %v2845_v22, %v2264_v23  ;;  %v2312_v60 = vld [vmem:[%s4327_s0 + $0xf8] sm:$0xf0]  ;;  %v2311_v63 = vor.u32 %v2859_v58, %v2310_v57  ;;  %v2320_v4 = vld [vmem:[%s4327_s0 + $0x110] sm:$0xf0]  ;;  %v2326_v5 = vld [vmem:[%s4327_s0 + $0x108] sm:$0xf] }
  0x1e   :  { %1188 = vmatpush.bf16.msra.mxu0 %v2956_v28  ;;  %v2270_v28 = vld [vmem:[%s4327_s0 + $0xa0] sm:$0xf]  ;;  %v2863_v6 = vld [vmem:[%s4327_s0 + $0x114] sm:$0xf0]  ;;  %v2861_v7 = vld [vmem:[%s4327_s0 + $0x10c] sm:$0xf] }
  0x1f   :  { %1357 = vmatpush.bf16.msra.mxu1 %v2964_v29  ;;  %v2850_v29 = vld [vmem:[%s4327_s0 + $0xac] sm:$0xf0]  ;;  %v2328_v8 = vld [vmem:[%s4327_s0 + $0x118] sm:$0xf0]  ;;  %v2334_v23 = vld [vmem:[%s4327_s0 + $0x120] sm:$0xf] }
  0x20   :  { %1526 = vmatpush.bf16.msra.mxu2 %v2972_v30  ;;  %v2848_v30 = vld [vmem:[%s4327_s0 + $0xa4] sm:$0xf]  ;;  %v2271_v36 = vor.u32 %v2850_v29, %v2270_v28  ;;  %v2342_v28 = vld [vmem:[%s4327_s0 + $0x128] sm:$0xf]  ;;  %v2867_v29 = vld [vmem:[%s4327_s0 + $0x134] sm:$0xf0] }
  0x21   :  { %1695 = vmatpush.bf16.msra.mxu3 %v2980_v31  ;;  %1189 = vmatmul.bf16.vlgmr.msra.gmra.mxu0 %v2191_v40  ;;  %v2272_v31 = vld [vmem:[%s4327_s0 + $0xb0] sm:$0xf0]  ;;  %v2286_v40 = vld [vmem:[%s4327_s0 + $0xc0] sm:$0xf]  ;;  %v2869_v57 = vld [vmem:[%s4327_s0 + $0x14c] sm:$0xf] }
  0x22   :  { %1358 = vmatmul.bf16.vlgmr.msra.gmra.mxu1 %v2195_v41  ;;  %v2275_v37 = vor.u32 %v2848_v30, %v2272_v31  ;;  %v2854_v41 = vld [vmem:[%s4327_s0 + $0xcc] sm:$0xf0]  ;;  %v2865_v30 = vld [vmem:[%s4327_s0 + $0x12c] sm:$0xf]  ;;  %v2344_v31 = vld [vmem:[%s4327_s0 + $0x138] sm:$0xf0] }
  0x23   :  { %1527 = vmatmul.bf16.vlgmr.msra.gmra.mxu2 %v2199_v42  ;;  %v2852_v42 = vld [vmem:[%s4327_s0 + $0xc4] sm:$0xf]  ;;  %v2287_v48 = vor.u32 %v2854_v41, %v2286_v40  ;;  %v2360_v58 = vld [vmem:[%s4327_s0 + $0x158] sm:$0xf0] }
  0x24   :  { %1696 = vmatmul.bf16.vlgmr.msra.gmra.mxu3 %v2203_v43  ;;  %v2288_v43 = vld [vmem:[%s4327_s0 + $0xd0] sm:$0xf0] }
  0x25   :  { %v2291_v49 = vor.u32 %v2852_v42, %v2288_v43 }
  0x31   :  { %1194 = vmatmul.bf16.gmra.mxu0 %v2207_v52  ;;  %v3276_v52 = vld [vmem:[%s4328_s2] ss:$0 sm:$0xff] }
  0x32   :  { %1363 = vmatmul.bf16.gmra.mxu1 %v2211_v53  ;;  %24 = vst.msk [vmem:[#allocation2] sm:$0xff] %vm23_vm0, %v3276_v52  ;;  %v2302_v53 = vld [vmem:[%s4327_s0 + $0xe0] sm:$0xf] }
  0x33   :  { %1532 = vmatmul.bf16.gmra.mxu2 %v2215_v54  ;;  %25 = vst.msk [vmem:[#allocation2 + $0x8] sm:$0xff] %vm23_vm0, %v3276_v52  ;;  %v2858_v54 = vld [vmem:[%s4327_s0 + $0xec] sm:$0xf0] }
  0x34   :  { %1701 = vmatmul.bf16.gmra.mxu3 %v2219_v55  ;;  %26 = vst.msk [vmem:[#allocation2 + $0x10] sm:$0xff] %vm23_vm0, %v3276_v52  ;;  %v2856_v55 = vld [vmem:[%s4327_s0 + $0xe4] sm:$0xf]  ;;  %v2303_v61 = vor.u32 %v2858_v54, %v2302_v53  ;;  %v2352_v53 = vld [vmem:[%s4327_s0 + $0x150] sm:$0xf0] }
  0x35   :  { %27 = vst.msk [vmem:[#allocation2 + $0x18] sm:$0xff] %vm23_vm0, %v3276_v52  ;;  %v2307_v62 = vor.u32 %v2856_v55, %v2304_v56  ;;  %v2358_v55 = vld [vmem:[%s4327_s0 + $0x148] sm:$0xf]  ;;  %v2871_v56 = vld [vmem:[%s4327_s0 + $0x154] sm:$0xf0] }
  0x36   :  { %28 = vst.msk [vmem:[#allocation2 + $0x20] sm:$0xff] %vm23_vm0, %v3276_v52 }
  0x37   :  { %29 = vst.msk [vmem:[#allocation2 + $0x28] sm:$0xff] %vm23_vm0, %v3276_v52 }
  0x38   :  { %30 = vst.msk [vmem:[#allocation2 + $0x30] sm:$0xff] %vm23_vm0, %v3276_v52 }
  0x39   :  { %31 = vst.msk [vmem:[#allocation2 + $0x38] sm:$0xff] %vm23_vm0, %v3276_v52  ;;  %v89_v21 = vld [vmem:[#allocation2] sm:$0xff] }
  0x3a   :  { %32 = vst.msk [vmem:[#allocation2 + $0x40] sm:$0xff] %vm23_vm0, %v3276_v52 }
  0x3b   :  { %33 = vst.msk [vmem:[#allocation2 + $0x48] sm:$0xff] %vm23_vm0, %v3276_v52 }
  0x3c   :  { %34 = vst.msk [vmem:[#allocation2 + $0x50] sm:$0xff] %vm23_vm0, %v3276_v52 }
  0x3d   :  { %35 = vst.msk [vmem:[#allocation2 + $0x58] sm:$0xff] %vm23_vm0, %v3276_v52 }
  0x3e   :  { %36 = vst.msk [vmem:[#allocation2 + $0x60] sm:$0xff] %vm23_vm0, %v3276_v52 }
  0x3f   :  { %37 = vst.msk [vmem:[#allocation2 + $0x68] sm:$0xff] %vm23_vm0, %v3276_v52 }
  0x40   :  { %38 = vst.msk [vmem:[#allocation2 + $0x70] sm:$0xff] %vm23_vm0, %v3276_v52 }
  0x41   :  { %1199 = vmatmul.bf16.gmra.mxu0 %v2223_v0  ;;  %v2315_v0 = vor.u32 %v2857_v59, %v2312_v60  ;;  %39 = vst.msk [vmem:[#allocation2 + $0x78] sm:$0xff] %vm23_vm0, %v3276_v52 }
  0x42   :  { %1368 = vmatmul.bf16.gmra.mxu1 %v2227_v1  ;;  %40 = vst.msk [vmem:[#allocation2 + $0x80] sm:$0xff] %vm23_vm0, %v3276_v52  ;;  %v2318_v1 = vld [vmem:[%s4327_s0 + $0x100] sm:$0xf] }
  0x43   :  { %1537 = vmatmul.bf16.gmra.mxu2 %v2231_v2  ;;  %41 = vst.msk [vmem:[#allocation2 + $0x88] sm:$0xff] %vm23_vm0, %v3276_v52  ;;  %v2862_v2 = vld [vmem:[%s4327_s0 + $0x10c] sm:$0xf0] }
  0x44   :  { %1706 = vmatmul.bf16.gmra.mxu3 %v2235_v3  ;;  %42 = vst.msk [vmem:[#allocation2 + $0x90] sm:$0xff] %vm23_vm0, %v3276_v52  ;;  %v2860_v3 = vld [vmem:[%s4327_s0 + $0x104] sm:$0xf]  ;;  %v2319_v9 = vor.u32 %v2862_v2, %v2318_v1  ;;  %v90_v1 = vld [vmem:[#allocation2 + $0x8] sm:$0xff] }
  0x45   :  { %43 = vst.msk [vmem:[#allocation2 + $0x98] sm:$0xff] %vm23_vm0, %v3276_v52  ;;  %v2323_v10 = vor.u32 %v2860_v3, %v2320_v4 }
  0x46   :  { %44 = vst.msk [vmem:[#allocation2 + $0xa0] sm:$0xff] %vm23_vm0, %v3276_v52 }
  0x47   :  { %45 = vst.msk [vmem:[#allocation2 + $0xa8] sm:$0xff] %vm23_vm0, %v3276_v52 }
  0x48   :  { %46 = vst.msk [vmem:[#allocation2 + $0xb0] sm:$0xff] %vm23_vm0, %v3276_v52 }
  0x49   :  { %47 = vst.msk [vmem:[#allocation2 + $0xb8] sm:$0xff] %vm23_vm0, %v3276_v52 }
  0x4a   :  { %48 = vst.msk [vmem:[#allocation2 + $0xc0] sm:$0xff] %vm23_vm0, %v3276_v52 }
  0x4b   :  { %49 = vst.msk [vmem:[#allocation2 + $0xc8] sm:$0xff] %vm23_vm0, %v3276_v52 }
  0x4c   :  { %50 = vst.msk [vmem:[#allocation2 + $0xd0] sm:$0xff] %vm23_vm0, %v3276_v52 }
  0x4d   :  { %51 = vst.msk [vmem:[#allocation2 + $0xd8] sm:$0xff] %vm23_vm0, %v3276_v52 }
  0x4e   :  { %52 = vst.msk [vmem:[#allocation2 + $0xe0] sm:$0xff] %vm23_vm0, %v3276_v52 }
  0x4f   :  { %53 = vst.msk [vmem:[#allocation2 + $0xe8] sm:$0xff] %vm23_vm0, %v3276_v52 }
  0x50   :  { %54 = vst.msk [vmem:[#allocation2 + $0xf0] sm:$0xff] %vm23_vm0, %v3276_v52 }
  0x51   :  { %1204 = vmatmul.bf16.gmra.mxu0 %v2239_v12  ;;  %55 = vst.msk [vmem:[#allocation2 + $0xf8] sm:$0xff] %vm23_vm0, %v3276_v52 }
  0x52   :  { %1373 = vmatmul.bf16.gmra.mxu1 %v2243_v13  ;;  %v2327_v13 = vor.u32 %v2863_v6, %v2326_v5  ;;  %56 = vst.msk [vmem:[#allocation2 + $0x100] sm:$0xff] %vm23_vm0, %v3276_v52  ;;  %v2359_v6 = vor.u32 %v2871_v56, %v2358_v55 }
  0x53   :  { %1542 = vmatmul.bf16.gmra.mxu2 %v2247_v14  ;;  %v2331_v14 = vor.u32 %v2861_v7, %v2328_v8  ;;  %57 = vst.msk [vmem:[#allocation2 + $0x108] sm:$0xff] %vm23_vm0, %v3276_v52  ;;  %v2363_v7 = vor.u32 %v2869_v57, %v2360_v58  ;;  %v91_v8 = vld [vmem:[#allocation2 + $0x10] sm:$0xff] }
  0x54   :  { %1711 = vmatmul.bf16.gmra.mxu3 %v2251_v15  ;;  %58 = vst.msk [vmem:[#allocation2 + $0x110] sm:$0xff] %vm23_vm0, %v3276_v52  ;;  %v95_v58 = vld [vmem:[#allocation2 + $0x30] sm:$0xff] }
  0x55   :  { %59 = vst.msk [vmem:[#allocation2 + $0x118] sm:$0xff] %vm23_vm0, %v3276_v52 }
  0x56   :  { %60 = vst.msk [vmem:[#allocation2 + $0x120] sm:$0xff] %vm23_vm0, %v3276_v52 }
  0x57   :  { %61 = vst.msk [vmem:[#allocation2 + $0x128] sm:$0xff] %vm23_vm0, %v3276_v52 }
  0x58   :  { %62 = vst.msk [vmem:[#allocation2 + $0x130] sm:$0xff] %vm23_vm0, %v3276_v52 }
  0x59   :  { %63 = vst.msk [vmem:[#allocation2 + $0x138] sm:$0xff] %vm23_vm0, %v3276_v52 }
  0x5a   :  { %64 = vst.msk [vmem:[#allocation2 + $0x140] sm:$0xff] %vm23_vm0, %v3276_v52 }
  0x5b   :  { %65 = vst.msk [vmem:[#allocation2 + $0x148] sm:$0xff] %vm23_vm0, %v3276_v52 }
  0x5c   :  { %66 = vst.msk [vmem:[#allocation2 + $0x150] sm:$0xff] %vm23_vm0, %v3276_v52 }
  0x5d   :  { %67 = vst.msk [vmem:[#allocation2 + $0x158] sm:$0xff] %vm23_vm0, %v3276_v52 }
  0x5e   :  { %68 = vst.msk [vmem:[#allocation2 + $0x160] sm:$0xff] %vm23_vm0, %v3276_v52 }
  0x5f   :  { %69 = vst.msk [vmem:[#allocation2 + $0x168] sm:$0xff] %vm23_vm0, %v3276_v52 }
  0x60   :  { %70 = vst.msk [vmem:[#allocation2 + $0x170] sm:$0xff] %vm23_vm0, %v3276_v52 }
  0x61   :  { %1209 = vmatmul.bf16.gmra.mxu0 %v2255_v24  ;;  %v2866_v24 = vld [vmem:[%s4327_s0 + $0x12c] sm:$0xf0]  ;;  %71 = vst.msk [vmem:[#allocation2 + $0x178] sm:$0xff] %vm23_vm0, %v3276_v52 }
  0x62   :  { %1378 = vmatmul.bf16.gmra.mxu1 %v2259_v25  ;;  %v2864_v25 = vld [vmem:[%s4327_s0 + $0x124] sm:$0xf]  ;;  %v2335_v34 = vor.u32 %v2866_v24, %v2334_v23  ;;  %72 = vst.msk [vmem:[#allocation2 + $0x180] sm:$0xff] %vm23_vm0, %v3276_v52 }
  0x63   :  { %1547 = vmatmul.bf16.gmra.mxu2 %v2263_v26  ;;  %v2336_v26 = vld [vmem:[%s4327_s0 + $0x130] sm:$0xf0]  ;;  %73 = vst.msk [vmem:[#allocation2 + $0x188] sm:$0xff] %vm23_vm0, %v3276_v52  ;;  %v2872_v24 = vld [vmem:[%s4327_s0 + $0x164] sm:$0xf] }
  0x64   :  { %1716 = vmatmul.bf16.gmra.mxu3 %v2267_v27  ;;  %v2339_v35 = vor.u32 %v2864_v25, %v2336_v26  ;;  %74 = vst.msk [vmem:[#allocation2 + $0x190] sm:$0xff] %vm23_vm0, %v3276_v52  ;;  %v2368_v25 = vld [vmem:[%s4327_s0 + $0x170] sm:$0xf0]  ;;  %v2374_v26 = vld [vmem:[%s4327_s0 + $0x168] sm:$0xf] }
  0x65   :  { %75 = vst.msk [vmem:[#allocation2 + $0x198] sm:$0xff] %vm23_vm0, %v3276_v52 }
  0x66   :  { %76 = vst.msk [vmem:[#allocation2 + $0x1a0] sm:$0xff] %vm23_vm0, %v3276_v52 }
  0x67   :  { %77 = vst.msk [vmem:[#allocation2 + $0x1a8] sm:$0xff] %vm23_vm0, %v3276_v52 }
  0x68   :  { %78 = vst.msk [vmem:[#allocation2 + $0x1b0] sm:$0xff] %vm23_vm0, %v3276_v52 }
  0x69   :  { %79 = vst.msk [vmem:[#allocation2 + $0x1b8] sm:$0xff] %vm23_vm0, %v3276_v52 }
  0x6a   :  { %80 = vst.msk [vmem:[#allocation2 + $0x1c0] sm:$0xff] %vm23_vm0, %v3276_v52 }
  0x6b   :  { %81 = vst.msk [vmem:[#allocation2 + $0x1c8] sm:$0xff] %vm23_vm0, %v3276_v52 }
  0x6c   :  { %82 = vst.msk [vmem:[#allocation2 + $0x1d0] sm:$0xff] %vm23_vm0, %v3276_v52 }
  0x6d   :  { %83 = vst.msk [vmem:[#allocation2 + $0x1d8] sm:$0xff] %vm23_vm0, %v3276_v52 }
  0x6e   :  { %84 = vst.msk [vmem:[#allocation2 + $0x1e0] sm:$0xff] %vm23_vm0, %v3276_v52 }
  0x6f   :  { %85 = vst.msk [vmem:[#allocation2 + $0x1e8] sm:$0xff] %vm23_vm0, %v3276_v52 }
  0x70   :  { %86 = vst.msk [vmem:[#allocation2 + $0x1f0] sm:$0xff] %vm23_vm0, %v3276_v52 }
  0x71   :  { %1214 = vmatmul.bf16.gmra.mxu0 %v2271_v36  ;;  %87 = vst.msk [vmem:[#allocation2 + $0x1f8] sm:$0xff] %vm23_vm0, %v3276_v52  ;;  %v2874_v52 = vld [vmem:[%s4327_s0 + $0x16c] sm:$0xf0] }
  0x72   :  { %1383 = vmatmul.bf16.gmra.mxu1 %v2275_v37 }
  0x73   :  { %1552 = vmatmul.bf16.gmra.mxu2 %v2279_v38  ;;  %v2343_v38 = vor.u32 %v2867_v29, %v2342_v28  ;;  %v2873_v28 = vld [vmem:[%s4327_s0 + $0x16c] sm:$0xf]  ;;  %v2376_v29 = vld [vmem:[%s4327_s0 + $0x178] sm:$0xf0] }
  0x74   :  { %1721 = vmatmul.bf16.gmra.mxu3 %v2283_v39  ;;  %v2347_v39 = vor.u32 %v2865_v30, %v2344_v31 }
  0x81   :  { %1219 = vmatmul.bf16.gmra.mxu0 %v2287_v48  ;;  %v2350_v48 = vld [vmem:[%s4327_s0 + $0x140] sm:$0xf] }
  0x82   :  { %1388 = vmatmul.bf16.gmra.mxu1 %v2291_v49  ;;  %v2870_v49 = vld [vmem:[%s4327_s0 + $0x14c] sm:$0xf0] }
  0x83   :  { %1557 = vmatmul.bf16.gmra.mxu2 %v2295_v50 }
  0x84   :  { %1726 = vmatmul.bf16.gmra.mxu3 %v2299_v51  ;;  %v2868_v51 = vld [vmem:[%s4327_s0 + $0x144] sm:$0xf] }
  0x91   :  { %1224 = vmatmul.bf16.gmra.mxu0 %v2303_v61 }
  0x92   :  { %1393 = vmatmul.bf16.gmra.mxu1 %v2307_v62 }
  0x93   :  { %1562 = vmatmul.bf16.gmra.mxu2 %v2311_v63  ;;  %v2351_v63 = vor.u32 %v2870_v49, %v2350_v48 }
  0x94   :  { %1731 = vmatmul.bf16.gmra.mxu3 %v2315_v0  ;;  %v2355_v0 = vor.u32 %v2868_v51, %v2352_v53 }
  0x9e   :  { %v1190_v11 = vpop.f32.mrf.mxu0 }
  0x9f   :  { %v1359_v12 = vpop.f32.mrf.mxu1 }
  0xa0   :  { %v1360_v15 = vadd.f32 %v1359_v12, %v1190_v11 }
  0xa1   :  { %1229 = vmatmul.bf16.gmra.mxu0 %v2319_v9  ;;  %v92_v9 = vld [vmem:[#allocation2 + $0x18] sm:$0xff] }
  0xa2   :  { %1398 = vmatmul.bf16.gmra.mxu1 %v2323_v10 }
  0xa3   :  { %1567 = vmatmul.bf16.gmra.mxu2 %v2327_v13 }
  0xa4   :  { %1736 = vmatmul.bf16.gmra.mxu3 %v2331_v14 }
  0xa6   :  { %v1528_v16 = vpop.f32.mrf.mxu2  ;;  %v1192_v19 = vpop.f32.mrf.mxu0 }
  0xa7   :  { %v1697_v17 = vpop.f32.mrf.mxu3  ;;  %v1529_v18 = vadd.f32 %v1528_v16, %v1360_v15  ;;  %v1361_v20 = vpop.f32.mrf.mxu1 }
  0xa8   :  { %v1362_v47 = vadd.f32 %v1361_v20, %v1192_v19  ;;  %v93_v20 = vld [vmem:[#allocation2 + $0x20] sm:$0xff] }
  0xa9   :  { %v1698_v22 = vadd.f32 %v1697_v17, %v1529_v18 }
  0xab   :  { %v1857_v27 = vadd.f32 %v1698_v22, %v89_v21  ;;  %v2366_v22 = vld [vmem:[%s4327_s0 + $0x160] sm:$0xf] }
  0xad   :  { %1922 = vst.msk [vmem:[#allocation2] sm:$0xff] %vm23_vm0, %v1857_v27  ;;  %v2875_v27 = vld [vmem:[%s4327_s0 + $0x174] sm:$0xf0] }
  0xae   :  { %v1530_v32 = vpop.f32.mrf.mxu2  ;;  %v1195_v36 = vpop.f32.mrf.mxu0 }
  0xaf   :  { %v1699_v33 = vpop.f32.mrf.mxu3  ;;  %v1364_v37 = vpop.f32.mrf.mxu1  ;;  %v1531_v50 = vadd.f32 %v1530_v32, %v1362_v47 }
  0xb0   :  { %v1365_v44 = vadd.f32 %v1364_v37, %v1195_v36  ;;  %v2367_v36 = vor.u32 %v2874_v52, %v2366_v22  ;;  %v2371_v37 = vor.u32 %v2872_v24, %v2368_v25 }
  0xb1   :  { %1234 = vmatmul.bf16.gmra.mxu0 %v2335_v34  ;;  %v1700_v60 = vadd.f32 %v1699_v33, %v1531_v50 }
  0xb2   :  { %1403 = vmatmul.bf16.gmra.mxu1 %v2339_v35 }
  0xb3   :  { %1572 = vmatmul.bf16.gmra.mxu2 %v2343_v38  ;;  %v1858_v11 = vadd.f32 %v1700_v60, %v90_v1  ;;  %v2382_v60 = vld [vmem:[%s4327_s0 + $0x180] sm:$0xf]  ;;  %v2390_v1 = vld [vmem:[%s4327_s0 + $0x188] sm:$0xf] }
  0xb4   :  { %1741 = vmatmul.bf16.gmra.mxu3 %v2347_v39  ;;  %v1989_v40 = vld [vmem:[#allocation2] sm:$0xff] }
  0xb5   :  { %v2053_v41 = vpack.c.bf16 %v1989_v40, %v1989_v40  ;;  %1923 = vst.msk [vmem:[#allocation2 + $0x8] sm:$0xff] %vm23_vm0, %v1858_v11 }
  0xb6   :  { %v1533_v42 = vpop.f32.mrf.mxu2  ;;  %v1197_v45 = vpop.f32.mrf.mxu0 }
  0xb7   :  { %v1702_v43 = vpop.f32.mrf.mxu3  ;;  %2118 = vst.msk [vmem:[%s4329_s3] sm:$0xf] %vm2117_vm1, %v2053_v41  ;;  %v1366_v46 = vpop.f32.mrf.mxu1  ;;  %v1534_v54 = vadd.f32 %v1533_v42, %v1365_v44  ;;  %v2379_v44 = vor.u32 %v2873_v28, %v2376_v29  ;;  %v2398_v29 = vld [vmem:[%s4327_s0 + $0x1a0] sm:$0xf] }
  0xb8   :  { %v1367_v59 = vadd.f32 %v1366_v46, %v1197_v45  ;;  %v94_v46 = vld [vmem:[#allocation2 + $0x28] sm:$0xff] }
  0xb9   :  { %v1703_v2 = vadd.f32 %v1702_v43, %v1534_v54  ;;  %v2375_v43 = vor.u32 %v2875_v27, %v2374_v26  ;;  %v97_v27 = vld [vmem:[#allocation2 + $0x40] sm:$0xff] }
  0xbb   :  { %v1859_v12 = vadd.f32 %v1703_v2, %v91_v8  ;;  %v2879_v2 = vld [vmem:[%s4327_s0 + $0x194] sm:$0xf0] }
  0xbc   :  { %v1990_v30 = vld [vmem:[#allocation2 + $0x8] sm:$0xff] }
  0xbd   :  { %1924 = vst.msk [vmem:[#allocation2 + $0x10] sm:$0xff] %vm23_vm0, %v1859_v12  ;;  %v2054_v32 = vpack.c.bf16 %v1990_v30, %v1990_v30  ;;  %v2882_v30 = vld [vmem:[%s4327_s0 + $0x1ac] sm:$0xf0] }
  0xbe   :  { %v1535_v61 = vpop.f32.mrf.mxu2  ;;  %v1200_v4 = vpop.f32.mrf.mxu0 }
  0xbf   :  { %v1704_v62 = vpop.f32.mrf.mxu3  ;;  %v1536_v3 = vadd.f32 %v1535_v61, %v1367_v59  ;;  %v1369_v5 = vpop.f32.mrf.mxu1  ;;  %2119 = vst.msk [vmem:[%s4329_s3 + $0x4] sm:$0xf] %vm2117_vm1, %v2054_v32  ;;  %v2878_v61 = vld [vmem:[%s4327_s0 + $0x18c] sm:$0xf0] }
  0xc0   :  { %v1370_v13 = vadd.f32 %v1369_v5, %v1200_v4  ;;  %v2877_v4 = vld [vmem:[%s4327_s0 + $0x18c] sm:$0xf]  ;;  %v2392_v5 = vld [vmem:[%s4327_s0 + $0x198] sm:$0xf0] }
  0xc1   :  { %v1705_v10 = vadd.f32 %v1704_v62, %v1536_v3  ;;  %1239 = vmatmul.bf16.gmra.mxu0 %v2351_v63  ;;  %v2876_v62 = vld [vmem:[%s4327_s0 + $0x184] sm:$0xf] }
  0xc2   :  { %1408 = vmatmul.bf16.gmra.mxu1 %v2355_v0  ;;  %v2384_v0 = vld [vmem:[%s4327_s0 + $0x190] sm:$0xf0] }
  0xc3   :  { %1577 = vmatmul.bf16.gmra.mxu2 %v2359_v6  ;;  %v1860_v14 = vadd.f32 %v1705_v10, %v92_v9  ;;  %v2383_v10 = vor.u32 %v2878_v61, %v2382_v60  ;;  %v2387_v11 = vor.u32 %v2876_v62, %v2384_v0  ;;  %v99_v62 = vld [vmem:[#allocation2 + $0x50] sm:$0xff]  ;;  %v2414_v0 = vld [vmem:[%s4327_s0 + $0x1c0] sm:$0xf] }
  0xc4   :  { %1746 = vmatmul.bf16.gmra.mxu3 %v2363_v7  ;;  %v1991_v33 = vld [vmem:[#allocation2 + $0x10] sm:$0xff] }
  0xc5   :  { %1925 = vst.msk [vmem:[#allocation2 + $0x18] sm:$0xff] %vm23_vm0, %v1860_v14  ;;  %v2055_v38 = vpack.c.bf16 %v1991_v33, %v1991_v33  ;;  %v2400_v33 = vld [vmem:[%s4327_s0 + $0x1b0] sm:$0xf0] }
  0xc6   :  { %v1538_v15 = vpop.f32.mrf.mxu2  ;;  %v1202_v18 = vpop.f32.mrf.mxu0 }
  0xc7   :  { %v1707_v16 = vpop.f32.mrf.mxu3  ;;  %v1539_v17 = vadd.f32 %v1538_v15, %v1370_v13  ;;  %v1371_v19 = vpop.f32.mrf.mxu1  ;;  %2120 = vst.msk [vmem:[%s4329_s3 + $0x8] sm:$0xf] %vm2117_vm1, %v2055_v38  ;;  %v2391_v15 = vor.u32 %v2879_v2, %v2390_v1  ;;  %v2408_v38 = vld [vmem:[%s4327_s0 + $0x1b8] sm:$0xf0]  ;;  %v2886_v1 = vld [vmem:[%s4327_s0 + $0x1cc] sm:$0xf0] }
  0xc8   :  { %v1372_v31 = vadd.f32 %v1371_v19, %v1202_v18  ;;  %v2884_v2 = vld [vmem:[%s4327_s0 + $0x1c4] sm:$0xf] }
  0xc9   :  { %v1708_v21 = vadd.f32 %v1707_v16, %v1539_v17  ;;  %v2395_v16 = vor.u32 %v2877_v4, %v2392_v5  ;;  %v96_v17 = vld [vmem:[#allocation2 + $0x38] sm:$0xff]  ;;  %v2416_v4 = vld [vmem:[%s4327_s0 + $0x1d0] sm:$0xf0]  ;;  %v2422_v5 = vld [vmem:[%s4327_s0 + $0x1c8] sm:$0xf] }
  0xcb   :  { %v1861_v23 = vadd.f32 %v1708_v21, %v93_v20 }
  0xcc   :  { %v1992_v39 = vld [vmem:[#allocation2 + $0x18] sm:$0xff] }
  0xcd   :  { %1926 = vst.msk [vmem:[#allocation2 + $0x20] sm:$0xff] %vm23_vm0, %v1861_v23  ;;  %v2056_v45 = vpack.c.bf16 %v1992_v39, %v1992_v39 }
  0xce   :  { %v1540_v34 = vpop.f32.mrf.mxu2  ;;  %v1205_v41 = vpop.f32.mrf.mxu0 }
  0xcf   :  { %v1709_v35 = vpop.f32.mrf.mxu3  ;;  %v1541_v40 = vadd.f32 %v1540_v34, %v1372_v31  ;;  %v1374_v42 = vpop.f32.mrf.mxu1  ;;  %2121 = vst.msk [vmem:[%s4329_s3 + $0xc] sm:$0xf] %vm2117_vm1, %v2056_v45  ;;  %v2880_v31 = vld [vmem:[%s4327_s0 + $0x1a4] sm:$0xf]  ;;  %v2406_v34 = vld [vmem:[%s4327_s0 + $0x1a8] sm:$0xf] }
  0xd0   :  { %v1375_v49 = vadd.f32 %v1374_v42, %v1205_v41 }
  0xd1   :  { %v1710_v47 = vadd.f32 %v1709_v35, %v1541_v40  ;;  %1244 = vmatmul.bf16.gmra.mxu0 %v2367_v36  ;;  %v2883_v35 = vld [vmem:[%s4327_s0 + $0x1b4] sm:$0xf0] }
  0xd2   :  { %1413 = vmatmul.bf16.gmra.mxu1 %v2371_v37  ;;  %v2881_v37 = vld [vmem:[%s4327_s0 + $0x1ac] sm:$0xf] }
  0xd3   :  { %v1862_v48 = vadd.f32 %v1710_v47, %v94_v46  ;;  %1582 = vmatmul.bf16.gmra.mxu2 %v2375_v43  ;;  %v2399_v43 = vor.u32 %v2882_v30, %v2398_v29 }
  0xd4   :  { %1751 = vmatmul.bf16.gmra.mxu3 %v2379_v44  ;;  %v1993_v50 = vld [vmem:[#allocation2 + $0x20] sm:$0xff]  ;;  %v2403_v44 = vor.u32 %v2880_v31, %v2400_v33 }
  0xd5   :  { %v2057_v51 = vpack.c.bf16 %v1993_v50, %v1993_v50  ;;  %1927 = vst.msk [vmem:[#allocation2 + $0x28] sm:$0xff] %vm23_vm0, %v1862_v48  ;;  %v2407_v48 = vor.u32 %v2883_v35, %v2406_v34  ;;  %v98_v50 = vld [vmem:[#allocation2 + $0x48] sm:$0xff]  ;;  %v101_v31 = vld [vmem:[#allocation2 + $0x60] sm:$0xff]  ;;  %v2890_v34 = vld [vmem:[%s4327_s0 + $0x1ec] sm:$0xf0] }
  0xd6   :  { %v1543_v53 = vpop.f32.mrf.mxu2  ;;  %v1207_v56 = vpop.f32.mrf.mxu0  ;;  %v2430_v33 = vld [vmem:[%s4327_s0 + $0x1e0] sm:$0xf]  ;;  %v2888_v35 = vld [vmem:[%s4327_s0 + $0x1e4] sm:$0xf] }
  0xd7   :  { %v1712_v54 = vpop.f32.mrf.mxu3  ;;  %2122 = vst.msk [vmem:[%s4329_s3 + $0x10] sm:$0xf] %vm2117_vm1, %v2057_v51  ;;  %v1544_v55 = vadd.f32 %v1543_v53, %v1375_v49  ;;  %v1376_v57 = vpop.f32.mrf.mxu1  ;;  %v2411_v49 = vor.u32 %v2881_v37, %v2408_v38  ;;  %v2432_v37 = vld [vmem:[%s4327_s0 + $0x1f0] sm:$0xf0]  ;;  %v2438_v38 = vld [vmem:[%s4327_s0 + $0x1e8] sm:$0xf] }
  0xd8   :  { %v1377_v7 = vadd.f32 %v1376_v57, %v1207_v56 }
  0xd9   :  { %v1713_v59 = vadd.f32 %v1712_v54, %v1544_v55 }
  0xdb   :  { %v1863_v63 = vadd.f32 %v1713_v59, %v95_v58 }
  0xdc   :  { %v1994_v3 = vld [vmem:[#allocation2 + $0x28] sm:$0xff] }
  0xdd   :  { %v2058_v6 = vpack.c.bf16 %v1994_v3, %v1994_v3  ;;  %1928 = vst.msk [vmem:[#allocation2 + $0x30] sm:$0xff] %vm23_vm0, %v1863_v63 }
  0xde   :  { %v1545_v8 = vpop.f32.mrf.mxu2  ;;  %v1210_v13 = vpop.f32.mrf.mxu0 }
  0xdf   :  { %v1714_v9 = vpop.f32.mrf.mxu3  ;;  %2123 = vst.msk [vmem:[%s4329_s3 + $0x14] sm:$0xf] %vm2117_vm1, %v2058_v6  ;;  %v1546_v12 = vadd.f32 %v1545_v8, %v1377_v7  ;;  %v1379_v14 = vpop.f32.mrf.mxu1  ;;  %v2887_v6 = vld [vmem:[%s4327_s0 + $0x1d4] sm:$0xf0]  ;;  %v2885_v8 = vld [vmem:[%s4327_s0 + $0x1cc] sm:$0xf] }
  0xe0   :  { %v1380_v20 = vadd.f32 %v1379_v14, %v1210_v13  ;;  %v2415_v14 = vor.u32 %v2886_v1, %v2414_v0 }
  0xe1   :  { %v1715_v18 = vadd.f32 %v1714_v9, %v1546_v12  ;;  %1249 = vmatmul.bf16.gmra.mxu0 %v2383_v10  ;;  %v2424_v9 = vld [vmem:[%s4327_s0 + $0x1d8] sm:$0xf0] }
  0xe2   :  { %1418 = vmatmul.bf16.gmra.mxu1 %v2387_v11 }
  0xe3   :  { %v1864_v19 = vadd.f32 %v1715_v18, %v96_v17  ;;  %1587 = vmatmul.bf16.gmra.mxu2 %v2391_v15  ;;  %v2419_v15 = vor.u32 %v2884_v2, %v2416_v4  ;;  %v103_v2 = vld [vmem:[#allocation2 + $0x70] sm:$0xff]  ;;  %v2446_v4 = vld [vmem:[%s4327_s0 + $0x200] sm:$0xf] }
  0xe4   :  { %1756 = vmatmul.bf16.gmra.mxu3 %v2395_v16  ;;  %v1995_v21 = vld [vmem:[#allocation2 + $0x30] sm:$0xff] }
  0xe5   :  { %v2059_v22 = vpack.c.bf16 %v1995_v21, %v1995_v21  ;;  %1929 = vst.msk [vmem:[#allocation2 + $0x38] sm:$0xff] %vm23_vm0, %v1864_v19  ;;  %v2423_v19 = vor.u32 %v2887_v6, %v2422_v5  ;;  %v100_v21 = vld [vmem:[#allocation2 + $0x58] sm:$0xff]  ;;  %v2894_v5 = vld [vmem:[%s4327_s0 + $0x20c] sm:$0xf0]  ;;  %v2892_v6 = vld [vmem:[%s4327_s0 + $0x204] sm:$0xf] }
  0xe6   :  { %v1548_v52 = vpop.f32.mrf.mxu2  ;;  %v1212_v25 = vpop.f32.mrf.mxu0 }
  0xe7   :  { %v1717_v23 = vpop.f32.mrf.mxu3  ;;  %2124 = vst.msk [vmem:[%s4329_s3 + $0x18] sm:$0xf] %vm2117_vm1, %v2059_v22  ;;  %v1549_v24 = vadd.f32 %v1548_v52, %v1380_v20  ;;  %v1381_v26 = vpop.f32.mrf.mxu1  ;;  %v2427_v20 = vor.u32 %v2885_v8, %v2424_v9  ;;  %v2448_v8 = vld [vmem:[%s4327_s0 + $0x210] sm:$0xf0]  ;;  %v2454_v9 = vld [vmem:[%s4327_s0 + $0x208] sm:$0xf] }
  0xe8   :  { %v1382_v40 = vadd.f32 %v1381_v26, %v1212_v25 }
  0xe9   :  { %v1718_v28 = vadd.f32 %v1717_v23, %v1549_v24 }
  0xeb   :  { %v1865_v32 = vadd.f32 %v1718_v28, %v97_v27 }
  0xec   :  { %v1996_v36 = vld [vmem:[#allocation2 + $0x38] sm:$0xff] }
  0xed   :  { %v2060_v39 = vpack.c.bf16 %v1996_v36, %v1996_v36  ;;  %1930 = vst.msk [vmem:[#allocation2 + $0x40] sm:$0xff] %vm23_vm0, %v1865_v32 }
  0xee   :  { %v1550_v41 = vpop.f32.mrf.mxu2  ;;  %v1215_v46 = vpop.f32.mrf.mxu0 }
  0xef   :  { %v1719_v42 = vpop.f32.mrf.mxu3  ;;  %2125 = vst.msk [vmem:[%s4329_s3 + $0x1c] sm:$0xf] %vm2117_vm1, %v2060_v39  ;;  %v1551_v45 = vadd.f32 %v1550_v41, %v1382_v40  ;;  %v1384_v47 = vpop.f32.mrf.mxu1  ;;  %v2891_v39 = vld [vmem:[%s4327_s0 + $0x1f4] sm:$0xf0]  ;;  %v2889_v41 = vld [vmem:[%s4327_s0 + $0x1ec] sm:$0xf] }
  0xf0   :  { %v1385_v54 = vadd.f32 %v1384_v47, %v1215_v46  ;;  %v2431_v47 = vor.u32 %v2890_v34, %v2430_v33 }
  0xf1   :  { %v1720_v51 = vadd.f32 %v1719_v42, %v1551_v45  ;;  %1254 = vmatmul.bf16.gmra.mxu0 %v2399_v43  ;;  %v2440_v42 = vld [vmem:[%s4327_s0 + $0x1f8] sm:$0xf0] }
  0xf2   :  { %1423 = vmatmul.bf16.gmra.mxu1 %v2403_v44 }
  0xf3   :  { %v1866_v53 = vadd.f32 %v1720_v51, %v98_v50  ;;  %1592 = vmatmul.bf16.gmra.mxu2 %v2407_v48  ;;  %v2435_v48 = vor.u32 %v2888_v35, %v2432_v37  ;;  %v105_v35 = vld [vmem:[#allocation2 + $0x80] sm:$0xff] }
  0xf4   :  { %1761 = vmatmul.bf16.gmra.mxu3 %v2411_v49  ;;  %v1997_v55 = vld [vmem:[#allocation2 + $0x40] sm:$0xff] }
  0xf5   :  { %v2061_v56 = vpack.c.bf16 %v1997_v55, %v1997_v55  ;;  %1931 = vst.msk [vmem:[#allocation2 + $0x48] sm:$0xff] %vm23_vm0, %v1866_v53  ;;  %v2439_v53 = vor.u32 %v2891_v39, %v2438_v38  ;;  %v102_v55 = vld [vmem:[#allocation2 + $0x68] sm:$0xff]  ;;  %v2462_v37 = vld [vmem:[%s4327_s0 + $0x220] sm:$0xf]  ;;  %v2898_v38 = vld [vmem:[%s4327_s0 + $0x22c] sm:$0xf0] }
  0xf6   :  { %v1553_v57 = vpop.f32.mrf.mxu2  ;;  %v1217_v60 = vpop.f32.mrf.mxu0  ;;  %v2896_v39 = vld [vmem:[%s4327_s0 + $0x224] sm:$0xf] }
  0xf7   :  { %v1722_v58 = vpop.f32.mrf.mxu3  ;;  %2126 = vst.msk [vmem:[%s4329_s3 + $0x20] sm:$0xf] %vm2117_vm1, %v2061_v56  ;;  %v1554_v59 = vadd.f32 %v1553_v57, %v1385_v54  ;;  %v1386_v61 = vpop.f32.mrf.mxu1  ;;  %v2443_v54 = vor.u32 %v2889_v41, %v2440_v42  ;;  %v2464_v41 = vld [vmem:[%s4327_s0 + $0x230] sm:$0xf0]  ;;  %v2470_v42 = vld [vmem:[%s4327_s0 + $0x228] sm:$0xf] }
  0xf8   :  { %v1387_v11 = vadd.f32 %v1386_v61, %v1217_v60 }
  0xf9   :  { %v1723_v63 = vadd.f32 %v1722_v58, %v1554_v59 }
  0xfb   :  { %v1867_v3 = vadd.f32 %v1723_v63, %v99_v62 }
  0xfc   :  { %v1998_v7 = vld [vmem:[#allocation2 + $0x48] sm:$0xff] }
  0xfd   :  { %v2062_v10 = vpack.c.bf16 %v1998_v7, %v1998_v7  ;;  %1932 = vst.msk [vmem:[#allocation2 + $0x50] sm:$0xff] %vm23_vm0, %v1867_v3 }
  0xfe   :  { %v1555_v12 = vpop.f32.mrf.mxu2  ;;  %v1220_v17 = vpop.f32.mrf.mxu0 }
  0xff   :  { %v1724_v13 = vpop.f32.mrf.mxu3  ;;  %2127 = vst.msk [vmem:[%s4329_s3 + $0x24] sm:$0xf] %vm2117_vm1, %v2062_v10  ;;  %v1556_v16 = vadd.f32 %v1555_v12, %v1387_v11  ;;  %v1389_v18 = vpop.f32.mrf.mxu1  ;;  %v2895_v10 = vld [vmem:[%s4327_s0 + $0x214] sm:$0xf0]  ;;  %v2893_v12 = vld [vmem:[%s4327_s0 + $0x20c] sm:$0xf] }
 0x100   :  { %v1390_v23 = vadd.f32 %v1389_v18, %v1220_v17  ;;  %v2447_v18 = vor.u32 %v2894_v5, %v2446_v4 }
 0x101   :  { %v1725_v22 = vadd.f32 %v1724_v13, %v1556_v16  ;;  %1259 = vmatmul.bf16.gmra.mxu0 %v2415_v14  ;;  %v2456_v13 = vld [vmem:[%s4327_s0 + $0x218] sm:$0xf0] }
 0x102   :  { %1428 = vmatmul.bf16.gmra.mxu1 %v2419_v15 }
 0x103   :  { %v1868_v52 = vadd.f32 %v1725_v22, %v100_v21  ;;  %1597 = vmatmul.bf16.gmra.mxu2 %v2423_v19  ;;  %v2451_v19 = vor.u32 %v2892_v6, %v2448_v8  ;;  %v107_v6 = vld [vmem:[#allocation2 + $0x90] sm:$0xff]  ;;  %v2478_v8 = vld [vmem:[%s4327_s0 + $0x240] sm:$0xf] }
 0x104   :  { %1766 = vmatmul.bf16.gmra.mxu3 %v2427_v20  ;;  %v1999_v24 = vld [vmem:[#allocation2 + $0x50] sm:$0xff] }
 0x105   :  { %v2063_v25 = vpack.c.bf16 %v1999_v24, %v1999_v24  ;;  %1933 = vst.msk [vmem:[#allocation2 + $0x58] sm:$0xff] %vm23_vm0, %v1868_v52  ;;  %v2455_v52 = vor.u32 %v2895_v10, %v2454_v9  ;;  %v104_v24 = vld [vmem:[#allocation2 + $0x78] sm:$0xff]  ;;  %v2902_v9 = vld [vmem:[%s4327_s0 + $0x24c] sm:$0xf0]  ;;  %v2900_v10 = vld [vmem:[%s4327_s0 + $0x244] sm:$0xf] }
 0x106   :  { %v1558_v26 = vpop.f32.mrf.mxu2  ;;  %v1222_v29 = vpop.f32.mrf.mxu0 }
 0x107   :  { %v1727_v27 = vpop.f32.mrf.mxu3  ;;  %2128 = vst.msk [vmem:[%s4329_s3 + $0x28] sm:$0xf] %vm2117_vm1, %v2063_v25  ;;  %v1559_v28 = vadd.f32 %v1558_v26, %v1390_v23  ;;  %v1391_v30 = vpop.f32.mrf.mxu1  ;;  %v2459_v23 = vor.u32 %v2893_v12, %v2456_v13  ;;  %v2480_v12 = vld [vmem:[%s4327_s0 + $0x250] sm:$0xf0]  ;;  %v2486_v13 = vld [vmem:[%s4327_s0 + $0x248] sm:$0xf] }
 0x108   :  { %v1392_v44 = vadd.f32 %v1391_v30, %v1222_v29 }
 0x109   :  { %v1728_v32 = vadd.f32 %v1727_v27, %v1559_v28 }
 0x10b   :  { %v1869_v36 = vadd.f32 %v1728_v32, %v101_v31 }
 0x10c   :  { %v2000_v40 = vld [vmem:[#allocation2 + $0x58] sm:$0xff] }
 0x10d   :  { %v2064_v43 = vpack.c.bf16 %v2000_v40, %v2000_v40  ;;  %1934 = vst.msk [vmem:[#allocation2 + $0x60] sm:$0xff] %vm23_vm0, %v1869_v36 }
 0x10e   :  { %v1560_v45 = vpop.f32.mrf.mxu2  ;;  %v1225_v50 = vpop.f32.mrf.mxu0 }
 0x10f   :  { %v1729_v46 = vpop.f32.mrf.mxu3  ;;  %2129 = vst.msk [vmem:[%s4329_s3 + $0x2c] sm:$0xf] %vm2117_vm1, %v2064_v43  ;;  %v1561_v49 = vadd.f32 %v1560_v45, %v1392_v44  ;;  %v1394_v51 = vpop.f32.mrf.mxu1  ;;  %v2899_v43 = vld [vmem:[%s4327_s0 + $0x234] sm:$0xf0]  ;;  %v2897_v45 = vld [vmem:[%s4327_s0 + $0x22c] sm:$0xf] }
 0x110   :  { %v1395_v58 = vadd.f32 %v1394_v51, %v1225_v50  ;;  %v2463_v51 = vor.u32 %v2898_v38, %v2462_v37 }
 0x111   :  { %v1730_v56 = vadd.f32 %v1729_v46, %v1561_v49  ;;  %1264 = vmatmul.bf16.gmra.mxu0 %v2431_v47  ;;  %v2472_v46 = vld [vmem:[%s4327_s0 + $0x238] sm:$0xf0] }
 0x112   :  { %1433 = vmatmul.bf16.gmra.mxu1 %v2435_v48 }
 0x113   :  { %v1870_v57 = vadd.f32 %v1730_v56, %v102_v55  ;;  %1602 = vmatmul.bf16.gmra.mxu2 %v2439_v53  ;;  %v2467_v53 = vor.u32 %v2896_v39, %v2464_v41  ;;  %v109_v39 = vld [vmem:[#allocation2 + $0xa0] sm:$0xff] }
 0x114   :  { %1771 = vmatmul.bf16.gmra.mxu3 %v2443_v54  ;;  %v2001_v59 = vld [vmem:[#allocation2 + $0x60] sm:$0xff] }
 0x115   :  { %v2065_v60 = vpack.c.bf16 %v2001_v59, %v2001_v59  ;;  %1935 = vst.msk [vmem:[#allocation2 + $0x68] sm:$0xff] %vm23_vm0, %v1870_v57  ;;  %v2471_v57 = vor.u32 %v2899_v43, %v2470_v42  ;;  %v106_v59 = vld [vmem:[#allocation2 + $0x88] sm:$0xff]  ;;  %v2494_v41 = vld [vmem:[%s4327_s0 + $0x260] sm:$0xf]  ;;  %v2906_v42 = vld [vmem:[%s4327_s0 + $0x26c] sm:$0xf0] }
 0x116   :  { %v1563_v61 = vpop.f32.mrf.mxu2  ;;  %v1227_v0 = vpop.f32.mrf.mxu0  ;;  %v2904_v43 = vld [vmem:[%s4327_s0 + $0x264] sm:$0xf] }
 0x117   :  { %v1732_v62 = vpop.f32.mrf.mxu3  ;;  %2130 = vst.msk [vmem:[%s4329_s3 + $0x30] sm:$0xf] %vm2117_vm1, %v2065_v60  ;;  %v1564_v63 = vadd.f32 %v1563_v61, %v1395_v58  ;;  %v1396_v1 = vpop.f32.mrf.mxu1  ;;  %v2475_v58 = vor.u32 %v2897_v45, %v2472_v46  ;;  %v2496_v45 = vld [vmem:[%s4327_s0 + $0x270] sm:$0xf0]  ;;  %v2502_v46 = vld [vmem:[%s4327_s0 + $0x268] sm:$0xf] }
 0x118   :  { %v1397_v15 = vadd.f32 %v1396_v1, %v1227_v0 }
 0x119   :  { %v1733_v3 = vadd.f32 %v1732_v62, %v1564_v63 }
 0x11b   :  { %v1871_v7 = vadd.f32 %v1733_v3, %v103_v2 }
 0x11c   :  { %v2002_v11 = vld [vmem:[#allocation2 + $0x68] sm:$0xff] }
 0x11d   :  { %v2066_v14 = vpack.c.bf16 %v2002_v11, %v2002_v11  ;;  %1936 = vst.msk [vmem:[#allocation2 + $0x70] sm:$0xff] %vm23_vm0, %v1871_v7 }
 0x11e   :  { %v1565_v16 = vpop.f32.mrf.mxu2  ;;  %v1230_v21 = vpop.f32.mrf.mxu0 }
 0x11f   :  { %v1734_v17 = vpop.f32.mrf.mxu3  ;;  %2131 = vst.msk [vmem:[%s4329_s3 + $0x34] sm:$0xf] %vm2117_vm1, %v2066_v14  ;;  %v1566_v20 = vadd.f32 %v1565_v16, %v1397_v15  ;;  %v1399_v22 = vpop.f32.mrf.mxu1  ;;  %v2903_v14 = vld [vmem:[%s4327_s0 + $0x254] sm:$0xf0]  ;;  %v2901_v16 = vld [vmem:[%s4327_s0 + $0x24c] sm:$0xf] }
 0x120   :  { %v1400_v27 = vadd.f32 %v1399_v22, %v1230_v21  ;;  %v2479_v22 = vor.u32 %v2902_v9, %v2478_v8 }
 0x121   :  { %v1735_v25 = vadd.f32 %v1734_v17, %v1566_v20  ;;  %1269 = vmatmul.bf16.gmra.mxu0 %v2447_v18  ;;  %v2488_v17 = vld [vmem:[%s4327_s0 + $0x258] sm:$0xf0] }
 0x122   :  { %1438 = vmatmul.bf16.gmra.mxu1 %v2451_v19 }
 0x123   :  { %v1872_v26 = vadd.f32 %v1735_v25, %v104_v24  ;;  %1607 = vmatmul.bf16.gmra.mxu2 %v2455_v52  ;;  %v2483_v52 = vor.u32 %v2900_v10, %v2480_v12  ;;  %v111_v10 = vld [vmem:[#allocation2 + $0xb0] sm:$0xff]  ;;  %v2510_v12 = vld [vmem:[%s4327_s0 + $0x280] sm:$0xf] }
 0x124   :  { %1776 = vmatmul.bf16.gmra.mxu3 %v2459_v23  ;;  %v2003_v28 = vld [vmem:[#allocation2 + $0x70] sm:$0xff] }
 0x125   :  { %v2067_v29 = vpack.c.bf16 %v2003_v28, %v2003_v28  ;;  %1937 = vst.msk [vmem:[#allocation2 + $0x78] sm:$0xff] %vm23_vm0, %v1872_v26  ;;  %v2487_v26 = vor.u32 %v2903_v14, %v2486_v13  ;;  %v108_v28 = vld [vmem:[#allocation2 + $0x98] sm:$0xff]  ;;  %v2910_v13 = vld [vmem:[%s4327_s0 + $0x28c] sm:$0xf0]  ;;  %v2908_v14 = vld [vmem:[%s4327_s0 + $0x284] sm:$0xf] }
 0x126   :  { %v1568_v30 = vpop.f32.mrf.mxu2  ;;  %v1232_v33 = vpop.f32.mrf.mxu0 }
 0x127   :  { %v1737_v31 = vpop.f32.mrf.mxu3  ;;  %2132 = vst.msk [vmem:[%s4329_s3 + $0x38] sm:$0xf] %vm2117_vm1, %v2067_v29  ;;  %v1569_v32 = vadd.f32 %v1568_v30, %v1400_v27  ;;  %v1401_v34 = vpop.f32.mrf.mxu1  ;;  %v2491_v27 = vor.u32 %v2901_v16, %v2488_v17  ;;  %v2512_v16 = vld [vmem:[%s4327_s0 + $0x290] sm:$0xf0]  ;;  %v2518_v17 = vld [vmem:[%s4327_s0 + $0x288] sm:$0xf] }
 0x128   :  { %v1402_v48 = vadd.f32 %v1401_v34, %v1232_v33 }
 0x129   :  { %v1738_v36 = vadd.f32 %v1737_v31, %v1569_v32 }
 0x12b   :  { %v1873_v40 = vadd.f32 %v1738_v36, %v105_v35 }
 0x12c   :  { %v2004_v44 = vld [vmem:[#allocation2 + $0x78] sm:$0xff] }
 0x12d   :  { %v2068_v47 = vpack.c.bf16 %v2004_v44, %v2004_v44  ;;  %1938 = vst.msk [vmem:[#allocation2 + $0x80] sm:$0xff] %vm23_vm0, %v1873_v40 }
 0x12e   :  { %v1570_v49 = vpop.f32.mrf.mxu2  ;;  %v1235_v55 = vpop.f32.mrf.mxu0 }
 0x12f   :  { %v1739_v50 = vpop.f32.mrf.mxu3  ;;  %2133 = vst.msk [vmem:[%s4329_s3 + $0x3c] sm:$0xf] %vm2117_vm1, %v2068_v47  ;;  %v1571_v54 = vadd.f32 %v1570_v49, %v1402_v48  ;;  %v1404_v56 = vpop.f32.mrf.mxu1  ;;  %v2907_v47 = vld [vmem:[%s4327_s0 + $0x274] sm:$0xf0]  ;;  %v2905_v49 = vld [vmem:[%s4327_s0 + $0x26c] sm:$0xf] }
 0x130   :  { %v1405_v62 = vadd.f32 %v1404_v56, %v1235_v55  ;;  %v2495_v56 = vor.u32 %v2906_v42, %v2494_v41 }
 0x131   :  { %v1740_v60 = vadd.f32 %v1739_v50, %v1571_v54  ;;  %1274 = vmatmul.bf16.gmra.mxu0 %v2463_v51  ;;  %v2504_v50 = vld [vmem:[%s4327_s0 + $0x278] sm:$0xf0] }
 0x132   :  { %1443 = vmatmul.bf16.gmra.mxu1 %v2467_v53 }
 0x133   :  { %v1874_v61 = vadd.f32 %v1740_v60, %v106_v59  ;;  %1612 = vmatmul.bf16.gmra.mxu2 %v2471_v57  ;;  %v2499_v57 = vor.u32 %v2904_v43, %v2496_v45  ;;  %v113_v43 = vld [vmem:[#allocation2 + $0xc0] sm:$0xff] }
 0x134   :  { %1781 = vmatmul.bf16.gmra.mxu3 %v2475_v58  ;;  %v2005_v63 = vld [vmem:[#allocation2 + $0x80] sm:$0xff] }
 0x135   :  { %v2069_v0 = vpack.c.bf16 %v2005_v63, %v2005_v63  ;;  %1939 = vst.msk [vmem:[#allocation2 + $0x88] sm:$0xff] %vm23_vm0, %v1874_v61  ;;  %v2503_v61 = vor.u32 %v2907_v47, %v2502_v46  ;;  %v110_v63 = vld [vmem:[#allocation2 + $0xa8] sm:$0xff]  ;;  %v2526_v45 = vld [vmem:[%s4327_s0 + $0x2a0] sm:$0xf]  ;;  %v2914_v46 = vld [vmem:[%s4327_s0 + $0x2ac] sm:$0xf0] }
 0x136   :  { %v1573_v1 = vpop.f32.mrf.mxu2  ;;  %v1237_v4 = vpop.f32.mrf.mxu0  ;;  %v2912_v47 = vld [vmem:[%s4327_s0 + $0x2a4] sm:$0xf] }
 0x137   :  { %v1742_v2 = vpop.f32.mrf.mxu3  ;;  %2134 = vst.msk [vmem:[%s4329_s3 + $0x40] sm:$0xf] %vm2117_vm1, %v2069_v0  ;;  %v1574_v3 = vadd.f32 %v1573_v1, %v1405_v62  ;;  %v1406_v5 = vpop.f32.mrf.mxu1  ;;  %v2507_v62 = vor.u32 %v2905_v49, %v2504_v50  ;;  %v2528_v49 = vld [vmem:[%s4327_s0 + $0x2b0] sm:$0xf0]  ;;  %v2534_v50 = vld [vmem:[%s4327_s0 + $0x2a8] sm:$0xf] }
 0x138   :  { %v1407_v19 = vadd.f32 %v1406_v5, %v1237_v4 }
 0x139   :  { %v1743_v7 = vadd.f32 %v1742_v2, %v1574_v3 }
 0x13b   :  { %v1875_v11 = vadd.f32 %v1743_v7, %v107_v6 }
 0x13c   :  { %v2006_v15 = vld [vmem:[#allocation2 + $0x88] sm:$0xff] }
 0x13d   :  { %v2070_v18 = vpack.c.bf16 %v2006_v15, %v2006_v15  ;;  %1940 = vst.msk [vmem:[#allocation2 + $0x90] sm:$0xff] %vm23_vm0, %v1875_v11 }
 0x13e   :  { %v1575_v20 = vpop.f32.mrf.mxu2  ;;  %v1240_v24 = vpop.f32.mrf.mxu0 }
 0x13f   :  { %v1744_v21 = vpop.f32.mrf.mxu3  ;;  %2135 = vst.msk [vmem:[%s4329_s3 + $0x44] sm:$0xf] %vm2117_vm1, %v2070_v18  ;;  %v1576_v23 = vadd.f32 %v1575_v20, %v1407_v19  ;;  %v1409_v25 = vpop.f32.mrf.mxu1  ;;  %v2911_v18 = vld [vmem:[%s4327_s0 + $0x294] sm:$0xf0]  ;;  %v2909_v20 = vld [vmem:[%s4327_s0 + $0x28c] sm:$0xf] }
 0x140   :  { %v1410_v31 = vadd.f32 %v1409_v25, %v1240_v24  ;;  %v2511_v25 = vor.u32 %v2910_v13, %v2510_v12 }
 0x141   :  { %v1745_v29 = vadd.f32 %v1744_v21, %v1576_v23  ;;  %1279 = vmatmul.bf16.gmra.mxu0 %v2479_v22  ;;  %v2520_v21 = vld [vmem:[%s4327_s0 + $0x298] sm:$0xf0] }
 0x142   :  { %1448 = vmatmul.bf16.gmra.mxu1 %v2483_v52 }
 0x143   :  { %v1876_v30 = vadd.f32 %v1745_v29, %v108_v28  ;;  %1617 = vmatmul.bf16.gmra.mxu2 %v2487_v26  ;;  %v2515_v26 = vor.u32 %v2908_v14, %v2512_v16  ;;  %v115_v14 = vld [vmem:[#allocation2 + $0xd0] sm:$0xff]  ;;  %v2542_v16 = vld [vmem:[%s4327_s0 + $0x2c0] sm:$0xf] }
 0x144   :  { %1786 = vmatmul.bf16.gmra.mxu3 %v2491_v27  ;;  %v2007_v32 = vld [vmem:[#allocation2 + $0x90] sm:$0xff] }
 0x145   :  { %v2071_v33 = vpack.c.bf16 %v2007_v32, %v2007_v32  ;;  %1941 = vst.msk [vmem:[#allocation2 + $0x98] sm:$0xff] %vm23_vm0, %v1876_v30  ;;  %v2519_v30 = vor.u32 %v2911_v18, %v2518_v17  ;;  %v112_v32 = vld [vmem:[#allocation2 + $0xb8] sm:$0xff]  ;;  %v2918_v17 = vld [vmem:[%s4327_s0 + $0x2cc] sm:$0xf0]  ;;  %v2916_v18 = vld [vmem:[%s4327_s0 + $0x2c4] sm:$0xf] }
 0x146   :  { %v1578_v34 = vpop.f32.mrf.mxu2  ;;  %v1242_v37 = vpop.f32.mrf.mxu0 }
 0x147   :  { %v1747_v35 = vpop.f32.mrf.mxu3  ;;  %2136 = vst.msk [vmem:[%s4329_s3 + $0x48] sm:$0xf] %vm2117_vm1, %v2071_v33  ;;  %v1579_v36 = vadd.f32 %v1578_v34, %v1410_v31  ;;  %v1411_v38 = vpop.f32.mrf.mxu1  ;;  %v2523_v31 = vor.u32 %v2909_v20, %v2520_v21  ;;  %v2544_v20 = vld [vmem:[%s4327_s0 + $0x2d0] sm:$0xf0]  ;;  %v2550_v21 = vld [vmem:[%s4327_s0 + $0x2c8] sm:$0xf] }
 0x148   :  { %v1412_v53 = vadd.f32 %v1411_v38, %v1242_v37 }
 0x149   :  { %v1748_v40 = vadd.f32 %v1747_v35, %v1579_v36 }
 0x14b   :  { %v1877_v44 = vadd.f32 %v1748_v40, %v109_v39 }
 0x14c   :  { %v2008_v48 = vld [vmem:[#allocation2 + $0x98] sm:$0xff] }
 0x14d   :  { %v2072_v51 = vpack.c.bf16 %v2008_v48, %v2008_v48  ;;  %1942 = vst.msk [vmem:[#allocation2 + $0xa0] sm:$0xff] %vm23_vm0, %v1877_v44 }
 0x14e   :  { %v1580_v54 = vpop.f32.mrf.mxu2  ;;  %v1245_v59 = vpop.f32.mrf.mxu0 }
 0x14f   :  { %v1749_v55 = vpop.f32.mrf.mxu3  ;;  %2137 = vst.msk [vmem:[%s4329_s3 + $0x4c] sm:$0xf] %vm2117_vm1, %v2072_v51  ;;  %v1581_v58 = vadd.f32 %v1580_v54, %v1412_v53  ;;  %v1414_v60 = vpop.f32.mrf.mxu1  ;;  %v2915_v51 = vld [vmem:[%s4327_s0 + $0x2b4] sm:$0xf0]  ;;  %v2913_v54 = vld [vmem:[%s4327_s0 + $0x2ac] sm:$0xf] }
 0x150   :  { %v1415_v2 = vadd.f32 %v1414_v60, %v1245_v59  ;;  %v2527_v60 = vor.u32 %v2914_v46, %v2526_v45 }
 0x151   :  { %v1750_v0 = vadd.f32 %v1749_v55, %v1581_v58  ;;  %1284 = vmatmul.bf16.gmra.mxu0 %v2495_v56  ;;  %v2536_v55 = vld [vmem:[%s4327_s0 + $0x2b8] sm:$0xf0] }
 0x152   :  { %1453 = vmatmul.bf16.gmra.mxu1 %v2499_v57 }
 0x153   :  { %v1878_v1 = vadd.f32 %v1750_v0, %v110_v63  ;;  %1622 = vmatmul.bf16.gmra.mxu2 %v2503_v61  ;;  %v2531_v61 = vor.u32 %v2912_v47, %v2528_v49  ;;  %v117_v47 = vld [vmem:[#allocation2 + $0xe0] sm:$0xff] }
 0x154   :  { %1791 = vmatmul.bf16.gmra.mxu3 %v2507_v62  ;;  %v2009_v3 = vld [vmem:[#allocation2 + $0xa0] sm:$0xff] }
 0x155   :  { %v2073_v4 = vpack.c.bf16 %v2009_v3, %v2009_v3  ;;  %1943 = vst.msk [vmem:[#allocation2 + $0xa8] sm:$0xff] %vm23_vm0, %v1878_v1  ;;  %v2535_v1 = vor.u32 %v2915_v51, %v2534_v50  ;;  %v114_v3 = vld [vmem:[#allocation2 + $0xc8] sm:$0xff]  ;;  %v2558_v49 = vld [vmem:[%s4327_s0 + $0x2e0] sm:$0xf]  ;;  %v2922_v50 = vld [vmem:[%s4327_s0 + $0x2ec] sm:$0xf0] }
 0x156   :  { %v1583_v5 = vpop.f32.mrf.mxu2  ;;  %v1247_v8 = vpop.f32.mrf.mxu0  ;;  %v2920_v51 = vld [vmem:[%s4327_s0 + $0x2e4] sm:$0xf] }
 0x157   :  { %v1752_v6 = vpop.f32.mrf.mxu3  ;;  %2138 = vst.msk [vmem:[%s4329_s3 + $0x50] sm:$0xf] %vm2117_vm1, %v2073_v4  ;;  %v1584_v7 = vadd.f32 %v1583_v5, %v1415_v2  ;;  %v1416_v9 = vpop.f32.mrf.mxu1  ;;  %v2539_v2 = vor.u32 %v2913_v54, %v2536_v55  ;;  %v2560_v54 = vld [vmem:[%s4327_s0 + $0x2f0] sm:$0xf0]  ;;  %v2566_v55 = vld [vmem:[%s4327_s0 + $0x2e8] sm:$0xf] }
 0x158   :  { %v1417_v52 = vadd.f32 %v1416_v9, %v1247_v8 }
 0x159   :  { %v1753_v11 = vadd.f32 %v1752_v6, %v1584_v7 }
 0x15b   :  { %v1879_v15 = vadd.f32 %v1753_v11, %v111_v10 }
 0x15c   :  { %v2010_v19 = vld [vmem:[#allocation2 + $0xa8] sm:$0xff] }
 0x15d   :  { %v2074_v22 = vpack.c.bf16 %v2010_v19, %v2010_v19  ;;  %1944 = vst.msk [vmem:[#allocation2 + $0xb0] sm:$0xff] %vm23_vm0, %v1879_v15 }
 0x15e   :  { %v1585_v23 = vpop.f32.mrf.mxu2  ;;  %v1250_v28 = vpop.f32.mrf.mxu0 }
 0x15f   :  { %v1754_v24 = vpop.f32.mrf.mxu3  ;;  %2139 = vst.msk [vmem:[%s4329_s3 + $0x54] sm:$0xf] %vm2117_vm1, %v2074_v22  ;;  %v1586_v27 = vadd.f32 %v1585_v23, %v1417_v52  ;;  %v1419_v29 = vpop.f32.mrf.mxu1  ;;  %v2919_v22 = vld [vmem:[%s4327_s0 + $0x2d4] sm:$0xf0]  ;;  %v2917_v23 = vld [vmem:[%s4327_s0 + $0x2cc] sm:$0xf] }
 0x160   :  { %v1420_v35 = vadd.f32 %v1419_v29, %v1250_v28  ;;  %v2543_v29 = vor.u32 %v2918_v17, %v2542_v16 }
 0x161   :  { %v1755_v33 = vadd.f32 %v1754_v24, %v1586_v27  ;;  %1289 = vmatmul.bf16.gmra.mxu0 %v2511_v25  ;;  %v2552_v24 = vld [vmem:[%s4327_s0 + $0x2d8] sm:$0xf0] }
 0x162   :  { %1458 = vmatmul.bf16.gmra.mxu1 %v2515_v26 }
 0x163   :  { %v1880_v34 = vadd.f32 %v1755_v33, %v112_v32  ;;  %1627 = vmatmul.bf16.gmra.mxu2 %v2519_v30  ;;  %v2547_v30 = vor.u32 %v2916_v18, %v2544_v20  ;;  %v119_v18 = vld [vmem:[#allocation2 + $0xf0] sm:$0xff]  ;;  %v2574_v20 = vld [vmem:[%s4327_s0 + $0x300] sm:$0xf] }
 0x164   :  { %1796 = vmatmul.bf16.gmra.mxu3 %v2523_v31  ;;  %v2011_v36 = vld [vmem:[#allocation2 + $0xb0] sm:$0xff] }
 0x165   :  { %v2075_v37 = vpack.c.bf16 %v2011_v36, %v2011_v36  ;;  %1945 = vst.msk [vmem:[#allocation2 + $0xb8] sm:$0xff] %vm23_vm0, %v1880_v34  ;;  %v2551_v34 = vor.u32 %v2919_v22, %v2550_v21  ;;  %v116_v36 = vld [vmem:[#allocation2 + $0xd8] sm:$0xff]  ;;  %v2926_v21 = vld [vmem:[%s4327_s0 + $0x30c] sm:$0xf0]  ;;  %v2924_v22 = vld [vmem:[%s4327_s0 + $0x304] sm:$0xf] }
 0x166   :  { %v1588_v38 = vpop.f32.mrf.mxu2  ;;  %v1252_v41 = vpop.f32.mrf.mxu0 }
 0x167   :  { %v1757_v39 = vpop.f32.mrf.mxu3  ;;  %2140 = vst.msk [vmem:[%s4329_s3 + $0x58] sm:$0xf] %vm2117_vm1, %v2075_v37  ;;  %v1589_v40 = vadd.f32 %v1588_v38, %v1420_v35  ;;  %v1421_v42 = vpop.f32.mrf.mxu1  ;;  %v2555_v35 = vor.u32 %v2917_v23, %v2552_v24  ;;  %v2576_v23 = vld [vmem:[%s4327_s0 + $0x310] sm:$0xf0]  ;;  %v2582_v24 = vld [vmem:[%s4327_s0 + $0x308] sm:$0xf] }
 0x168   :  { %v1422_v57 = vadd.f32 %v1421_v42, %v1252_v41 }
 0x169   :  { %v1758_v44 = vadd.f32 %v1757_v39, %v1589_v40 }
 0x16b   :  { %v1881_v48 = vadd.f32 %v1758_v44, %v113_v43 }
 0x16c   :  { %v2012_v53 = vld [vmem:[#allocation2 + $0xb8] sm:$0xff] }
 0x16d   :  { %v2076_v56 = vpack.c.bf16 %v2012_v53, %v2012_v53  ;;  %1946 = vst.msk [vmem:[#allocation2 + $0xc0] sm:$0xff] %vm23_vm0, %v1881_v48 }
 0x16e   :  { %v1590_v58 = vpop.f32.mrf.mxu2  ;;  %v1255_v63 = vpop.f32.mrf.mxu0 }
 0x16f   :  { %v1759_v59 = vpop.f32.mrf.mxu3  ;;  %2141 = vst.msk [vmem:[%s4329_s3 + $0x5c] sm:$0xf] %vm2117_vm1, %v2076_v56  ;;  %v1591_v62 = vadd.f32 %v1590_v58, %v1422_v57  ;;  %v1424_v0 = vpop.f32.mrf.mxu1  ;;  %v2923_v56 = vld [vmem:[%s4327_s0 + $0x2f4] sm:$0xf0]  ;;  %v2921_v58 = vld [vmem:[%s4327_s0 + $0x2ec] sm:$0xf] }
 0x170   :  { %v1425_v6 = vadd.f32 %v1424_v0, %v1255_v63  ;;  %v2559_v0 = vor.u32 %v2922_v50, %v2558_v49 }
 0x171   :  { %v1760_v4 = vadd.f32 %v1759_v59, %v1591_v62  ;;  %1294 = vmatmul.bf16.gmra.mxu0 %v2527_v60  ;;  %v2568_v59 = vld [vmem:[%s4327_s0 + $0x2f8] sm:$0xf0] }
 0x172   :  { %1463 = vmatmul.bf16.gmra.mxu1 %v2531_v61 }
 0x173   :  { %v1882_v5 = vadd.f32 %v1760_v4, %v114_v3  ;;  %1632 = vmatmul.bf16.gmra.mxu2 %v2535_v1  ;;  %v2563_v1 = vor.u32 %v2920_v51, %v2560_v54  ;;  %v121_v51 = vld [vmem:[#allocation2 + $0x100] sm:$0xff] }
 0x174   :  { %1801 = vmatmul.bf16.gmra.mxu3 %v2539_v2  ;;  %v2013_v7 = vld [vmem:[#allocation2 + $0xc0] sm:$0xff] }
 0x175   :  { %v2077_v8 = vpack.c.bf16 %v2013_v7, %v2013_v7  ;;  %1947 = vst.msk [vmem:[#allocation2 + $0xc8] sm:$0xff] %vm23_vm0, %v1882_v5  ;;  %v2567_v5 = vor.u32 %v2923_v56, %v2566_v55  ;;  %v118_v7 = vld [vmem:[#allocation2 + $0xe8] sm:$0xff]  ;;  %v2590_v54 = vld [vmem:[%s4327_s0 + $0x320] sm:$0xf]  ;;  %v2930_v55 = vld [vmem:[%s4327_s0 + $0x32c] sm:$0xf0] }
 0x176   :  { %v1593_v9 = vpop.f32.mrf.mxu2  ;;  %v1257_v12 = vpop.f32.mrf.mxu0  ;;  %v2928_v56 = vld [vmem:[%s4327_s0 + $0x324] sm:$0xf] }
 0x177   :  { %v1762_v10 = vpop.f32.mrf.mxu3  ;;  %2142 = vst.msk [vmem:[%s4329_s3 + $0x60] sm:$0xf] %vm2117_vm1, %v2077_v8  ;;  %v1594_v11 = vadd.f32 %v1593_v9, %v1425_v6  ;;  %v1426_v13 = vpop.f32.mrf.mxu1  ;;  %v2571_v6 = vor.u32 %v2921_v58, %v2568_v59  ;;  %v2592_v58 = vld [vmem:[%s4327_s0 + $0x330] sm:$0xf0]  ;;  %v2598_v59 = vld [vmem:[%s4327_s0 + $0x328] sm:$0xf] }
 0x178   :  { %v1427_v26 = vadd.f32 %v1426_v13, %v1257_v12 }
 0x179   :  { %v1763_v15 = vadd.f32 %v1762_v10, %v1594_v11 }
 0x17b   :  { %v1883_v19 = vadd.f32 %v1763_v15, %v115_v14 }
 0x17c   :  { %v2014_v52 = vld [vmem:[#allocation2 + $0xc8] sm:$0xff] }
 0x17d   :  { %v2078_v25 = vpack.c.bf16 %v2014_v52, %v2014_v52  ;;  %1948 = vst.msk [vmem:[#allocation2 + $0xd0] sm:$0xff] %vm23_vm0, %v1883_v19 }
 0x17e   :  { %v1595_v27 = vpop.f32.mrf.mxu2  ;;  %v1260_v32 = vpop.f32.mrf.mxu0 }
 0x17f   :  { %v1764_v28 = vpop.f32.mrf.mxu3  ;;  %2143 = vst.msk [vmem:[%s4329_s3 + $0x64] sm:$0xf] %vm2117_vm1, %v2078_v25  ;;  %v1596_v31 = vadd.f32 %v1595_v27, %v1427_v26  ;;  %v1429_v33 = vpop.f32.mrf.mxu1  ;;  %v2927_v25 = vld [vmem:[%s4327_s0 + $0x314] sm:$0xf0]  ;;  %v2925_v27 = vld [vmem:[%s4327_s0 + $0x30c] sm:$0xf] }
 0x180   :  { %v1430_v39 = vadd.f32 %v1429_v33, %v1260_v32  ;;  %v2575_v33 = vor.u32 %v2926_v21, %v2574_v20 }
 0x181   :  { %v1765_v37 = vadd.f32 %v1764_v28, %v1596_v31  ;;  %1299 = vmatmul.bf16.gmra.mxu0 %v2543_v29  ;;  %v2584_v28 = vld [vmem:[%s4327_s0 + $0x318] sm:$0xf0] }
 0x182   :  { %1468 = vmatmul.bf16.gmra.mxu1 %v2547_v30 }
 0x183   :  { %v1884_v38 = vadd.f32 %v1765_v37, %v116_v36  ;;  %1637 = vmatmul.bf16.gmra.mxu2 %v2551_v34  ;;  %v2579_v34 = vor.u32 %v2924_v22, %v2576_v23  ;;  %v123_v22 = vld [vmem:[#allocation2 + $0x110] sm:$0xff]  ;;  %v2606_v23 = vld [vmem:[%s4327_s0 + $0x340] sm:$0xf] }
 0x184   :  { %1806 = vmatmul.bf16.gmra.mxu3 %v2555_v35  ;;  %v2015_v40 = vld [vmem:[#allocation2 + $0xd0] sm:$0xff] }
 0x185   :  { %v2079_v41 = vpack.c.bf16 %v2015_v40, %v2015_v40  ;;  %1949 = vst.msk [vmem:[#allocation2 + $0xd8] sm:$0xff] %vm23_vm0, %v1884_v38  ;;  %v2583_v38 = vor.u32 %v2927_v25, %v2582_v24  ;;  %v120_v40 = vld [vmem:[#allocation2 + $0xf8] sm:$0xff]  ;;  %v2934_v24 = vld [vmem:[%s4327_s0 + $0x34c] sm:$0xf0]  ;;  %v2932_v25 = vld [vmem:[%s4327_s0 + $0x344] sm:$0xf] }
 0x186   :  { %v1598_v42 = vpop.f32.mrf.mxu2  ;;  %v1262_v45 = vpop.f32.mrf.mxu0 }
 0x187   :  { %v1767_v43 = vpop.f32.mrf.mxu3  ;;  %2144 = vst.msk [vmem:[%s4329_s3 + $0x68] sm:$0xf] %vm2117_vm1, %v2079_v41  ;;  %v1599_v44 = vadd.f32 %v1598_v42, %v1430_v39  ;;  %v1431_v46 = vpop.f32.mrf.mxu1  ;;  %v2587_v39 = vor.u32 %v2925_v27, %v2584_v28  ;;  %v2608_v27 = vld [vmem:[%s4327_s0 + $0x350] sm:$0xf0]  ;;  %v2614_v28 = vld [vmem:[%s4327_s0 + $0x348] sm:$0xf] }
 0x188   :  { %v1432_v61 = vadd.f32 %v1431_v46, %v1262_v45 }
 0x189   :  { %v1768_v48 = vadd.f32 %v1767_v43, %v1599_v44 }
 0x18b   :  { %v1885_v53 = vadd.f32 %v1768_v48, %v117_v47 }
 0x18c   :  { %v2016_v57 = vld [vmem:[#allocation2 + $0xd8] sm:$0xff] }
 0x18d   :  { %v2080_v60 = vpack.c.bf16 %v2016_v57, %v2016_v57  ;;  %1950 = vst.msk [vmem:[#allocation2 + $0xe0] sm:$0xff] %vm23_vm0, %v1885_v53 }
 0x18e   :  { %v1600_v62 = vpop.f32.mrf.mxu2  ;;  %v1265_v3 = vpop.f32.mrf.mxu0 }
 0x18f   :  { %v1769_v63 = vpop.f32.mrf.mxu3  ;;  %2145 = vst.msk [vmem:[%s4329_s3 + $0x6c] sm:$0xf] %vm2117_vm1, %v2080_v60  ;;  %v1601_v2 = vadd.f32 %v1600_v62, %v1432_v61  ;;  %v1434_v4 = vpop.f32.mrf.mxu1  ;;  %v2931_v60 = vld [vmem:[%s4327_s0 + $0x334] sm:$0xf0]  ;;  %v2929_v62 = vld [vmem:[%s4327_s0 + $0x32c] sm:$0xf] }
 0x190   :  { %v1435_v10 = vadd.f32 %v1434_v4, %v1265_v3  ;;  %v2591_v4 = vor.u32 %v2930_v55, %v2590_v54 }
 0x191   :  { %v1770_v8 = vadd.f32 %v1769_v63, %v1601_v2  ;;  %1304 = vmatmul.bf16.gmra.mxu0 %v2559_v0  ;;  %v2600_v63 = vld [vmem:[%s4327_s0 + $0x338] sm:$0xf0] }
 0x192   :  { %1473 = vmatmul.bf16.gmra.mxu1 %v2563_v1 }
 0x193   :  { %v1886_v9 = vadd.f32 %v1770_v8, %v118_v7  ;;  %1642 = vmatmul.bf16.gmra.mxu2 %v2567_v5  ;;  %v2595_v5 = vor.u32 %v2928_v56, %v2592_v58  ;;  %v125_v56 = vld [vmem:[#allocation2 + $0x120] sm:$0xff] }
 0x194   :  { %1811 = vmatmul.bf16.gmra.mxu3 %v2571_v6  ;;  %v2017_v11 = vld [vmem:[#allocation2 + $0xe0] sm:$0xff] }
 0x195   :  { %v2081_v12 = vpack.c.bf16 %v2017_v11, %v2017_v11  ;;  %1951 = vst.msk [vmem:[#allocation2 + $0xe8] sm:$0xff] %vm23_vm0, %v1886_v9  ;;  %v2599_v9 = vor.u32 %v2931_v60, %v2598_v59  ;;  %v122_v11 = vld [vmem:[#allocation2 + $0x108] sm:$0xff]  ;;  %v2622_v58 = vld [vmem:[%s4327_s0 + $0x360] sm:$0xf]  ;;  %v2938_v59 = vld [vmem:[%s4327_s0 + $0x36c] sm:$0xf0] }
 0x196   :  { %v1603_v13 = vpop.f32.mrf.mxu2  ;;  %v1267_v16 = vpop.f32.mrf.mxu0  ;;  %v2936_v60 = vld [vmem:[%s4327_s0 + $0x364] sm:$0xf] }
 0x197   :  { %v1772_v14 = vpop.f32.mrf.mxu3  ;;  %2146 = vst.msk [vmem:[%s4329_s3 + $0x70] sm:$0xf] %vm2117_vm1, %v2081_v12  ;;  %v1604_v15 = vadd.f32 %v1603_v13, %v1435_v10  ;;  %v1436_v17 = vpop.f32.mrf.mxu1  ;;  %v2603_v10 = vor.u32 %v2929_v62, %v2600_v63  ;;  %v2624_v62 = vld [vmem:[%s4327_s0 + $0x370] sm:$0xf0]  ;;  %v2630_v63 = vld [vmem:[%s4327_s0 + $0x368] sm:$0xf] }
 0x198   :  { %v1437_v30 = vadd.f32 %v1436_v17, %v1267_v16 }
 0x199   :  { %v1773_v19 = vadd.f32 %v1772_v14, %v1604_v15 }
 0x19b   :  { %v1887_v52 = vadd.f32 %v1773_v19, %v119_v18 }
 0x19c   :  { %v2018_v26 = vld [vmem:[#allocation2 + $0xe8] sm:$0xff] }
 0x19d   :  { %v2082_v29 = vpack.c.bf16 %v2018_v26, %v2018_v26  ;;  %1952 = vst.msk [vmem:[#allocation2 + $0xf0] sm:$0xff] %vm23_vm0, %v1887_v52 }
 0x19e   :  { %v1605_v31 = vpop.f32.mrf.mxu2  ;;  %v1270_v36 = vpop.f32.mrf.mxu0 }
 0x19f   :  { %v1774_v32 = vpop.f32.mrf.mxu3  ;;  %2147 = vst.msk [vmem:[%s4329_s3 + $0x74] sm:$0xf] %vm2117_vm1, %v2082_v29  ;;  %v1606_v35 = vadd.f32 %v1605_v31, %v1437_v30  ;;  %v1439_v37 = vpop.f32.mrf.mxu1  ;;  %v2935_v29 = vld [vmem:[%s4327_s0 + $0x354] sm:$0xf0]  ;;  %v2933_v31 = vld [vmem:[%s4327_s0 + $0x34c] sm:$0xf] }
 0x1a0   :  { %v1440_v43 = vadd.f32 %v1439_v37, %v1270_v36  ;;  %v2607_v37 = vor.u32 %v2934_v24, %v2606_v23 }
 0x1a1   :  { %v1775_v41 = vadd.f32 %v1774_v32, %v1606_v35  ;;  %1309 = vmatmul.bf16.gmra.mxu0 %v2575_v33  ;;  %v2616_v32 = vld [vmem:[%s4327_s0 + $0x358] sm:$0xf0] }
 0x1a2   :  { %1478 = vmatmul.bf16.gmra.mxu1 %v2579_v34 }
 0x1a3   :  { %v1888_v42 = vadd.f32 %v1775_v41, %v120_v40  ;;  %1647 = vmatmul.bf16.gmra.mxu2 %v2583_v38  ;;  %v2611_v38 = vor.u32 %v2932_v25, %v2608_v27  ;;  %v127_v25 = vld [vmem:[#allocation2 + $0x130] sm:$0xff]  ;;  %v2638_v27 = vld [vmem:[%s4327_s0 + $0x380] sm:$0xf] }
 0x1a4   :  { %1816 = vmatmul.bf16.gmra.mxu3 %v2587_v39  ;;  %v2019_v44 = vld [vmem:[#allocation2 + $0xf0] sm:$0xff] }
 0x1a5   :  { %v2083_v45 = vpack.c.bf16 %v2019_v44, %v2019_v44  ;;  %1953 = vst.msk [vmem:[#allocation2 + $0xf8] sm:$0xff] %vm23_vm0, %v1888_v42  ;;  %v2615_v42 = vor.u32 %v2935_v29, %v2614_v28  ;;  %v124_v44 = vld [vmem:[#allocation2 + $0x118] sm:$0xff]  ;;  %v2942_v28 = vld [vmem:[%s4327_s0 + $0x38c] sm:$0xf0]  ;;  %v2940_v29 = vld [vmem:[%s4327_s0 + $0x384] sm:$0xf] }
 0x1a6   :  { %v1608_v46 = vpop.f32.mrf.mxu2  ;;  %v1272_v49 = vpop.f32.mrf.mxu0 }
 0x1a7   :  { %v1777_v47 = vpop.f32.mrf.mxu3  ;;  %2148 = vst.msk [vmem:[%s4329_s3 + $0x78] sm:$0xf] %vm2117_vm1, %v2083_v45  ;;  %v1609_v48 = vadd.f32 %v1608_v46, %v1440_v43  ;;  %v1441_v50 = vpop.f32.mrf.mxu1  ;;  %v2619_v43 = vor.u32 %v2933_v31, %v2616_v32  ;;  %v2640_v31 = vld [vmem:[%s4327_s0 + $0x390] sm:$0xf0]  ;;  %v2646_v32 = vld [vmem:[%s4327_s0 + $0x388] sm:$0xf] }
 0x1a8   :  { %v1442_v1 = vadd.f32 %v1441_v50, %v1272_v49 }
 0x1a9   :  { %v1778_v53 = vadd.f32 %v1777_v47, %v1609_v48 }
 0x1ab   :  { %v1889_v57 = vadd.f32 %v1778_v53, %v121_v51 }
 0x1ac   :  { %v2020_v61 = vld [vmem:[#allocation2 + $0xf8] sm:$0xff] }
 0x1ad   :  { %v2084_v0 = vpack.c.bf16 %v2020_v61, %v2020_v61  ;;  %1954 = vst.msk [vmem:[#allocation2 + $0x100] sm:$0xff] %vm23_vm0, %v1889_v57 }
 0x1ae   :  { %v1610_v2 = vpop.f32.mrf.mxu2  ;;  %v1275_v7 = vpop.f32.mrf.mxu0 }
 0x1af   :  { %v1779_v3 = vpop.f32.mrf.mxu3  ;;  %2149 = vst.msk [vmem:[%s4329_s3 + $0x7c] sm:$0xf] %vm2117_vm1, %v2084_v0  ;;  %v1611_v6 = vadd.f32 %v1610_v2, %v1442_v1  ;;  %v1444_v8 = vpop.f32.mrf.mxu1  ;;  %v2939_v0 = vld [vmem:[%s4327_s0 + $0x374] sm:$0xf0]  ;;  %v2937_v2 = vld [vmem:[%s4327_s0 + $0x36c] sm:$0xf] }
 0x1b0   :  { %v1445_v14 = vadd.f32 %v1444_v8, %v1275_v7  ;;  %v2623_v8 = vor.u32 %v2938_v59, %v2622_v58 }
 0x1b1   :  { %v1780_v12 = vadd.f32 %v1779_v3, %v1611_v6  ;;  %1314 = vmatmul.bf16.gmra.mxu0 %v2591_v4  ;;  %v2632_v3 = vld [vmem:[%s4327_s0 + $0x378] sm:$0xf0] }
 0x1b2   :  { %1483 = vmatmul.bf16.gmra.mxu1 %v2595_v5 }
 0x1b3   :  { %v1890_v13 = vadd.f32 %v1780_v12, %v122_v11  ;;  %1652 = vmatmul.bf16.gmra.mxu2 %v2599_v9  ;;  %v2627_v9 = vor.u32 %v2936_v60, %v2624_v62  ;;  %v129_v60 = vld [vmem:[#allocation2 + $0x140] sm:$0xff] }
 0x1b4   :  { %1821 = vmatmul.bf16.gmra.mxu3 %v2603_v10  ;;  %v2021_v15 = vld [vmem:[#allocation2 + $0x100] sm:$0xff] }
 0x1b5   :  { %v2085_v16 = vpack.c.bf16 %v2021_v15, %v2021_v15  ;;  %1955 = vst.msk [vmem:[#allocation2 + $0x108] sm:$0xff] %vm23_vm0, %v1890_v13  ;;  %v2631_v13 = vor.u32 %v2939_v0, %v2630_v63  ;;  %v126_v15 = vld [vmem:[#allocation2 + $0x128] sm:$0xff]  ;;  %v2654_v62 = vld [vmem:[%s4327_s0 + $0x3a0] sm:$0xf]  ;;  %v2946_v63 = vld [vmem:[%s4327_s0 + $0x3ac] sm:$0xf0] }
 0x1b6   :  { %v1613_v17 = vpop.f32.mrf.mxu2  ;;  %v1277_v20 = vpop.f32.mrf.mxu0  ;;  %v2944_v0 = vld [vmem:[%s4327_s0 + $0x3a4] sm:$0xf] }
 0x1b7   :  { %v1782_v18 = vpop.f32.mrf.mxu3  ;;  %2150 = vst.msk [vmem:[%s4329_s3 + $0x80] sm:$0xf] %vm2117_vm1, %v2085_v16  ;;  %v1614_v19 = vadd.f32 %v1613_v17, %v1445_v14  ;;  %v1446_v21 = vpop.f32.mrf.mxu1  ;;  %v2635_v14 = vor.u32 %v2937_v2, %v2632_v3  ;;  %v2656_v2 = vld [vmem:[%s4327_s0 + $0x3b0] sm:$0xf0]  ;;  %v2662_v3 = vld [vmem:[%s4327_s0 + $0x3a8] sm:$0xf] }
 0x1b8   :  { %v1447_v34 = vadd.f32 %v1446_v21, %v1277_v20 }
 0x1b9   :  { %v1783_v52 = vadd.f32 %v1782_v18, %v1614_v19 }
 0x1bb   :  { %v1891_v26 = vadd.f32 %v1783_v52, %v123_v22 }
 0x1bc   :  { %v2022_v30 = vld [vmem:[#allocation2 + $0x108] sm:$0xff] }
 0x1bd   :  { %v2086_v33 = vpack.c.bf16 %v2022_v30, %v2022_v30  ;;  %1956 = vst.msk [vmem:[#allocation2 + $0x110] sm:$0xff] %vm23_vm0, %v1891_v26 }
 0x1be   :  { %v1615_v35 = vpop.f32.mrf.mxu2  ;;  %v1280_v40 = vpop.f32.mrf.mxu0 }
 0x1bf   :  { %v1784_v36 = vpop.f32.mrf.mxu3  ;;  %2151 = vst.msk [vmem:[%s4329_s3 + $0x84] sm:$0xf] %vm2117_vm1, %v2086_v33  ;;  %v1616_v39 = vadd.f32 %v1615_v35, %v1447_v34  ;;  %v1449_v41 = vpop.f32.mrf.mxu1  ;;  %v2943_v33 = vld [vmem:[%s4327_s0 + $0x394] sm:$0xf0]  ;;  %v2941_v35 = vld [vmem:[%s4327_s0 + $0x38c] sm:$0xf] }
 0x1c0   :  { %v1450_v47 = vadd.f32 %v1449_v41, %v1280_v40  ;;  %v2639_v41 = vor.u32 %v2942_v28, %v2638_v27 }
 0x1c1   :  { %v1785_v45 = vadd.f32 %v1784_v36, %v1616_v39  ;;  %1319 = vmatmul.bf16.gmra.mxu0 %v2607_v37  ;;  %v2648_v36 = vld [vmem:[%s4327_s0 + $0x398] sm:$0xf0] }
 0x1c2   :  { %1488 = vmatmul.bf16.gmra.mxu1 %v2611_v38 }
 0x1c3   :  { %v1892_v46 = vadd.f32 %v1785_v45, %v124_v44  ;;  %1657 = vmatmul.bf16.gmra.mxu2 %v2615_v42  ;;  %v2643_v42 = vor.u32 %v2940_v29, %v2640_v31  ;;  %v131_v29 = vld [vmem:[#allocation2 + $0x150] sm:$0xff]  ;;  %v2670_v31 = vld [vmem:[%s4327_s0 + $0x3c0] sm:$0xf] }
 0x1c4   :  { %1826 = vmatmul.bf16.gmra.mxu3 %v2619_v43  ;;  %v2023_v48 = vld [vmem:[#allocation2 + $0x110] sm:$0xff] }
 0x1c5   :  { %v2087_v49 = vpack.c.bf16 %v2023_v48, %v2023_v48  ;;  %1957 = vst.msk [vmem:[#allocation2 + $0x118] sm:$0xff] %vm23_vm0, %v1892_v46  ;;  %v2647_v46 = vor.u32 %v2943_v33, %v2646_v32  ;;  %v128_v48 = vld [vmem:[#allocation2 + $0x138] sm:$0xff]  ;;  %v2950_v32 = vld [vmem:[%s4327_s0 + $0x3cc] sm:$0xf0]  ;;  %v2948_v33 = vld [vmem:[%s4327_s0 + $0x3c4] sm:$0xf] }
 0x1c6   :  { %v1618_v50 = vpop.f32.mrf.mxu2  ;;  %v1282_v54 = vpop.f32.mrf.mxu0 }
 0x1c7   :  { %v1787_v51 = vpop.f32.mrf.mxu3  ;;  %2152 = vst.msk [vmem:[%s4329_s3 + $0x88] sm:$0xf] %vm2117_vm1, %v2087_v49  ;;  %v1619_v53 = vadd.f32 %v1618_v50, %v1450_v47  ;;  %v1451_v55 = vpop.f32.mrf.mxu1  ;;  %v2651_v47 = vor.u32 %v2941_v35, %v2648_v36  ;;  %v2672_v35 = vld [vmem:[%s4327_s0 + $0x3d0] sm:$0xf0]  ;;  %v2678_v36 = vld [vmem:[%s4327_s0 + $0x3c8] sm:$0xf] }
 0x1c8   :  { %v1452_v5 = vadd.f32 %v1451_v55, %v1282_v54 }
 0x1c9   :  { %v1788_v57 = vadd.f32 %v1787_v51, %v1619_v53 }
 0x1cb   :  { %v1893_v61 = vadd.f32 %v1788_v57, %v125_v56 }
 0x1cc   :  { %v2024_v1 = vld [vmem:[#allocation2 + $0x118] sm:$0xff] }
 0x1cd   :  { %v2088_v4 = vpack.c.bf16 %v2024_v1, %v2024_v1  ;;  %1958 = vst.msk [vmem:[#allocation2 + $0x120] sm:$0xff] %vm23_vm0, %v1893_v61 }
 0x1ce   :  { %v1620_v6 = vpop.f32.mrf.mxu2  ;;  %v1285_v11 = vpop.f32.mrf.mxu0 }
 0x1cf   :  { %v1789_v7 = vpop.f32.mrf.mxu3  ;;  %2153 = vst.msk [vmem:[%s4329_s3 + $0x8c] sm:$0xf] %vm2117_vm1, %v2088_v4  ;;  %v1621_v10 = vadd.f32 %v1620_v6, %v1452_v5  ;;  %v1454_v12 = vpop.f32.mrf.mxu1  ;;  %v2947_v4 = vld [vmem:[%s4327_s0 + $0x3b4] sm:$0xf0]  ;;  %v2945_v6 = vld [vmem:[%s4327_s0 + $0x3ac] sm:$0xf] }
 0x1d0   :  { %v1455_v18 = vadd.f32 %v1454_v12, %v1285_v11  ;;  %v2655_v12 = vor.u32 %v2946_v63, %v2654_v62 }
 0x1d1   :  { %v1790_v16 = vadd.f32 %v1789_v7, %v1621_v10  ;;  %1324 = vmatmul.bf16.gmra.mxu0 %v2623_v8  ;;  %v2664_v7 = vld [vmem:[%s4327_s0 + $0x3b8] sm:$0xf0] }
 0x1d2   :  { %1493 = vmatmul.bf16.gmra.mxu1 %v2627_v9 }
 0x1d3   :  { %v1894_v17 = vadd.f32 %v1790_v16, %v126_v15  ;;  %1662 = vmatmul.bf16.gmra.mxu2 %v2631_v13  ;;  %v2659_v13 = vor.u32 %v2944_v0, %v2656_v2  ;;  %v133_v0 = vld [vmem:[#allocation2 + $0x160] sm:$0xff] }
 0x1d4   :  { %1831 = vmatmul.bf16.gmra.mxu3 %v2635_v14  ;;  %v2025_v19 = vld [vmem:[#allocation2 + $0x120] sm:$0xff] }
 0x1d5   :  { %v2089_v20 = vpack.c.bf16 %v2025_v19, %v2025_v19  ;;  %1959 = vst.msk [vmem:[#allocation2 + $0x128] sm:$0xff] %vm23_vm0, %v1894_v17  ;;  %v2663_v17 = vor.u32 %v2947_v4, %v2662_v3  ;;  %v130_v19 = vld [vmem:[#allocation2 + $0x148] sm:$0xff]  ;;  %v2686_v2 = vld [vmem:[%s4327_s0 + $0x3e0] sm:$0xf]  ;;  %v2954_v3 = vld [vmem:[%s4327_s0 + $0x3ec] sm:$0xf0] }
 0x1d6   :  { %v1623_v21 = vpop.f32.mrf.mxu2  ;;  %v1287_v23 = vpop.f32.mrf.mxu0  ;;  %v2952_v4 = vld [vmem:[%s4327_s0 + $0x3e4] sm:$0xf] }
 0x1d7   :  { %v1792_v22 = vpop.f32.mrf.mxu3  ;;  %2154 = vst.msk [vmem:[%s4329_s3 + $0x90] sm:$0xf] %vm2117_vm1, %v2089_v20  ;;  %v1624_v52 = vadd.f32 %v1623_v21, %v1455_v18  ;;  %v1456_v24 = vpop.f32.mrf.mxu1  ;;  %v2667_v18 = vor.u32 %v2945_v6, %v2664_v7  ;;  %v2688_v6 = vld [vmem:[%s4327_s0 + $0x3f0] sm:$0xf0]  ;;  %v2694_v7 = vld [vmem:[%s4327_s0 + $0x3e8] sm:$0xf] }
 0x1d8   :  { %v1457_v38 = vadd.f32 %v1456_v24, %v1287_v23 }
 0x1d9   :  { %v1793_v26 = vadd.f32 %v1792_v22, %v1624_v52 }
 0x1db   :  { %v1895_v30 = vadd.f32 %v1793_v26, %v127_v25 }
 0x1dc   :  { %v2026_v34 = vld [vmem:[#allocation2 + $0x128] sm:$0xff] }
 0x1dd   :  { %v2090_v37 = vpack.c.bf16 %v2026_v34, %v2026_v34  ;;  %1960 = vst.msk [vmem:[#allocation2 + $0x130] sm:$0xff] %vm23_vm0, %v1895_v30 }
 0x1de   :  { %v1625_v39 = vpop.f32.mrf.mxu2  ;;  %v1290_v44 = vpop.f32.mrf.mxu0 }
 0x1df   :  { %v1794_v40 = vpop.f32.mrf.mxu3  ;;  %2155 = vst.msk [vmem:[%s4329_s3 + $0x94] sm:$0xf] %vm2117_vm1, %v2090_v37  ;;  %v1626_v43 = vadd.f32 %v1625_v39, %v1457_v38  ;;  %v1459_v45 = vpop.f32.mrf.mxu1  ;;  %v2951_v37 = vld [vmem:[%s4327_s0 + $0x3d4] sm:$0xf0]  ;;  %v2949_v39 = vld [vmem:[%s4327_s0 + $0x3cc] sm:$0xf] }
 0x1e0   :  { %v1460_v51 = vadd.f32 %v1459_v45, %v1290_v44  ;;  %v2671_v45 = vor.u32 %v2950_v32, %v2670_v31 }
 0x1e1   :  { %v1795_v49 = vadd.f32 %v1794_v40, %v1626_v43  ;;  %1329 = vmatmul.bf16.gmra.mxu0 %v2639_v41  ;;  %v2680_v40 = vld [vmem:[%s4327_s0 + $0x3d8] sm:$0xf0] }
 0x1e2   :  { %1498 = vmatmul.bf16.gmra.mxu1 %v2643_v42 }
 0x1e3   :  { %v1896_v50 = vadd.f32 %v1795_v49, %v128_v48  ;;  %1667 = vmatmul.bf16.gmra.mxu2 %v2647_v46  ;;  %v2675_v46 = vor.u32 %v2948_v33, %v2672_v35  ;;  %v135_v33 = vld [vmem:[#allocation2 + $0x170] sm:$0xff] }
 0x1e4   :  { %1836 = vmatmul.bf16.gmra.mxu3 %v2651_v47  ;;  %v2027_v53 = vld [vmem:[#allocation2 + $0x130] sm:$0xff] }
 0x1e5   :  { %v2091_v54 = vpack.c.bf16 %v2027_v53, %v2027_v53  ;;  %1961 = vst.msk [vmem:[#allocation2 + $0x138] sm:$0xff] %vm23_vm0, %v1896_v50  ;;  %v2679_v50 = vor.u32 %v2951_v37, %v2678_v36  ;;  %v132_v53 = vld [vmem:[#allocation2 + $0x158] sm:$0xff] }
 0x1e6   :  { %v1628_v55 = vpop.f32.mrf.mxu2  ;;  %v1292_v58 = vpop.f32.mrf.mxu0 }
 0x1e7   :  { %v1797_v56 = vpop.f32.mrf.mxu3  ;;  %2156 = vst.msk [vmem:[%s4329_s3 + $0x98] sm:$0xf] %vm2117_vm1, %v2091_v54  ;;  %v1629_v57 = vadd.f32 %v1628_v55, %v1460_v51  ;;  %v1461_v59 = vpop.f32.mrf.mxu1  ;;  %v2683_v51 = vor.u32 %v2949_v39, %v2680_v40 }
 0x1e8   :  { %v1462_v9 = vadd.f32 %v1461_v59, %v1292_v58 }
 0x1e9   :  { %v1798_v61 = vadd.f32 %v1797_v56, %v1629_v57 }
 0x1eb   :  { %v1897_v1 = vadd.f32 %v1798_v61, %v129_v60 }
 0x1ec   :  { %v2028_v5 = vld [vmem:[#allocation2 + $0x138] sm:$0xff] }
 0x1ed   :  { %v2092_v8 = vpack.c.bf16 %v2028_v5, %v2028_v5  ;;  %1962 = vst.msk [vmem:[#allocation2 + $0x140] sm:$0xff] %vm23_vm0, %v1897_v1 }
 0x1ee   :  { %v1630_v10 = vpop.f32.mrf.mxu2  ;;  %v1295_v15 = vpop.f32.mrf.mxu0 }
 0x1ef   :  { %v1799_v11 = vpop.f32.mrf.mxu3  ;;  %2157 = vst.msk [vmem:[%s4329_s3 + $0x9c] sm:$0xf] %vm2117_vm1, %v2092_v8  ;;  %v1631_v14 = vadd.f32 %v1630_v10, %v1462_v9  ;;  %v1464_v16 = vpop.f32.mrf.mxu1  ;;  %v2955_v8 = vld [vmem:[%s4327_s0 + $0x3f4] sm:$0xf0]  ;;  %v2953_v10 = vld [vmem:[%s4327_s0 + $0x3ec] sm:$0xf] }
 0x1f0   :  { %v1465_v22 = vadd.f32 %v1464_v16, %v1295_v15  ;;  %v2687_v16 = vor.u32 %v2954_v3, %v2686_v2  ;;  %v138_v3 = vld [vmem:[#allocation2 + $0x188] sm:$0xff] }
 0x1f1   :  { %v1800_v20 = vadd.f32 %v1799_v11, %v1631_v14  ;;  %1334 = vmatmul.bf16.gmra.mxu0 %v2655_v12  ;;  %v2696_v11 = vld [vmem:[%s4327_s0 + $0x3f8] sm:$0xf0] }
 0x1f2   :  { %1503 = vmatmul.bf16.gmra.mxu1 %v2659_v13 }
 0x1f3   :  { %v1898_v21 = vadd.f32 %v1800_v20, %v130_v19  ;;  %1672 = vmatmul.bf16.gmra.mxu2 %v2663_v17  ;;  %v2691_v17 = vor.u32 %v2952_v4, %v2688_v6 }
 0x1f4   :  { %1841 = vmatmul.bf16.gmra.mxu3 %v2667_v18  ;;  %v2029_v52 = vld [vmem:[#allocation2 + $0x140] sm:$0xff] }
 0x1f5   :  { %v2093_v23 = vpack.c.bf16 %v2029_v52, %v2029_v52  ;;  %1963 = vst.msk [vmem:[#allocation2 + $0x148] sm:$0xff] %vm23_vm0, %v1898_v21  ;;  %v2695_v21 = vor.u32 %v2955_v8, %v2694_v7  ;;  %v134_v52 = vld [vmem:[#allocation2 + $0x168] sm:$0xff] }
 0x1f6   :  { %v1633_v24 = vpop.f32.mrf.mxu2  ;;  %v1297_v27 = vpop.f32.mrf.mxu0 }
 0x1f7   :  { %v1802_v25 = vpop.f32.mrf.mxu3  ;;  %2158 = vst.msk [vmem:[%s4329_s3 + $0xa0] sm:$0xf] %vm2117_vm1, %v2093_v23  ;;  %v1634_v26 = vadd.f32 %v1633_v24, %v1465_v22  ;;  %v1466_v28 = vpop.f32.mrf.mxu1  ;;  %v2699_v22 = vor.u32 %v2953_v10, %v2696_v11 }
 0x1f8   :  { %v1467_v42 = vadd.f32 %v1466_v28, %v1297_v27 }
 0x1f9   :  { %v1803_v30 = vadd.f32 %v1802_v25, %v1634_v26 }
 0x1fb   :  { %v1899_v34 = vadd.f32 %v1803_v30, %v131_v29 }
 0x1fc   :  { %v2030_v38 = vld [vmem:[#allocation2 + $0x148] sm:$0xff] }
 0x1fd   :  { %v2094_v41 = vpack.c.bf16 %v2030_v38, %v2030_v38  ;;  %1964 = vst.msk [vmem:[#allocation2 + $0x150] sm:$0xff] %vm23_vm0, %v1899_v34 }
 0x1fe   :  { %v1635_v43 = vpop.f32.mrf.mxu2  ;;  %v1300_v48 = vpop.f32.mrf.mxu0 }
 0x1ff   :  { %v1804_v44 = vpop.f32.mrf.mxu3  ;;  %2159 = vst.msk [vmem:[%s4329_s3 + $0xa4] sm:$0xf] %vm2117_vm1, %v2094_v41  ;;  %v1636_v47 = vadd.f32 %v1635_v43, %v1467_v42  ;;  %v1469_v49 = vpop.f32.mrf.mxu1 }
 0x200   :  { %v1470_v56 = vadd.f32 %v1469_v49, %v1300_v48 }
 0x201   :  { %v1805_v54 = vadd.f32 %v1804_v44, %v1636_v47  ;;  %1339 = vmatmul.bf16.gmra.mxu0 %v2671_v45  ;;  %v136_v44 = vld [vmem:[#allocation2 + $0x178] sm:$0xff] }
 0x202   :  { %1508 = vmatmul.bf16.gmra.mxu1 %v2675_v46 }
 0x203   :  { %v1900_v55 = vadd.f32 %v1805_v54, %v132_v53  ;;  %1677 = vmatmul.bf16.gmra.mxu2 %v2679_v50 }
 0x204   :  { %1846 = vmatmul.bf16.gmra.mxu3 %v2683_v51  ;;  %v2031_v57 = vld [vmem:[#allocation2 + $0x150] sm:$0xff] }
 0x205   :  { %v2095_v58 = vpack.c.bf16 %v2031_v57, %v2031_v57  ;;  %1965 = vst.msk [vmem:[#allocation2 + $0x158] sm:$0xff] %vm23_vm0, %v1900_v55 }
 0x206   :  { %v1638_v59 = vpop.f32.mrf.mxu2  ;;  %v1302_v62 = vpop.f32.mrf.mxu0 }
 0x207   :  { %v1807_v60 = vpop.f32.mrf.mxu3  ;;  %2160 = vst.msk [vmem:[%s4329_s3 + $0xa8] sm:$0xf] %vm2117_vm1, %v2095_v58  ;;  %v1639_v61 = vadd.f32 %v1638_v59, %v1470_v56  ;;  %v1471_v63 = vpop.f32.mrf.mxu1  ;;  %v137_v56 = vld [vmem:[#allocation2 + $0x180] sm:$0xff] }
 0x208   :  { %v1472_v13 = vadd.f32 %v1471_v63, %v1302_v62 }
 0x209   :  { %v1808_v1 = vadd.f32 %v1807_v60, %v1639_v61 }
 0x20b   :  { %v1901_v5 = vadd.f32 %v1808_v1, %v133_v0 }
 0x20c   :  { %v2032_v9 = vld [vmem:[#allocation2 + $0x158] sm:$0xff] }
 0x20d   :  { %v2096_v12 = vpack.c.bf16 %v2032_v9, %v2032_v9  ;;  %1966 = vst.msk [vmem:[#allocation2 + $0x160] sm:$0xff] %vm23_vm0, %v1901_v5 }
 0x20e   :  { %v1640_v14 = vpop.f32.mrf.mxu2  ;;  %v1305_v19 = vpop.f32.mrf.mxu0 }
 0x20f   :  { %v1809_v15 = vpop.f32.mrf.mxu3  ;;  %2161 = vst.msk [vmem:[%s4329_s3 + $0xac] sm:$0xf] %vm2117_vm1, %v2096_v12  ;;  %v1641_v18 = vadd.f32 %v1640_v14, %v1472_v13  ;;  %v1474_v20 = vpop.f32.mrf.mxu1  ;;  %v139_v14 = vld [vmem:[#allocation2 + $0x190] sm:$0xff] }
 0x210   :  { %v1475_v25 = vadd.f32 %v1474_v20, %v1305_v19 }
 0x211   :  { %v1810_v23 = vadd.f32 %v1809_v15, %v1641_v18  ;;  %1344 = vmatmul.bf16.gmra.mxu0 %v2687_v16 }
 0x212   :  { %1513 = vmatmul.bf16.gmra.mxu1 %v2691_v17 }
 0x213   :  { %v1902_v24 = vadd.f32 %v1810_v23, %v134_v52  ;;  %1682 = vmatmul.bf16.gmra.mxu2 %v2695_v21 }
 0x214   :  { %1851 = vmatmul.bf16.gmra.mxu3 %v2699_v22  ;;  %v2033_v26 = vld [vmem:[#allocation2 + $0x160] sm:$0xff] }
 0x215   :  { %v2097_v27 = vpack.c.bf16 %v2033_v26, %v2033_v26  ;;  %1967 = vst.msk [vmem:[#allocation2 + $0x168] sm:$0xff] %vm23_vm0, %v1902_v24  ;;  %v140_v24 = vld [vmem:[#allocation2 + $0x198] sm:$0xff] }
 0x216   :  { %v1643_v28 = vpop.f32.mrf.mxu2  ;;  %v1307_v31 = vpop.f32.mrf.mxu0 }
 0x217   :  { %v1812_v29 = vpop.f32.mrf.mxu3  ;;  %2162 = vst.msk [vmem:[%s4329_s3 + $0xb0] sm:$0xf] %vm2117_vm1, %v2097_v27  ;;  %v1644_v30 = vadd.f32 %v1643_v28, %v1475_v25  ;;  %v1476_v32 = vpop.f32.mrf.mxu1 }
 0x218   :  { %v1477_v38 = vadd.f32 %v1476_v32, %v1307_v31 }
 0x219   :  { %v1813_v34 = vadd.f32 %v1812_v29, %v1644_v30 }
 0x21b   :  { %v1903_v35 = vadd.f32 %v1813_v34, %v135_v33 }
 0x21c   :  { %v2034_v36 = vld [vmem:[#allocation2 + $0x168] sm:$0xff] }
 0x21d   :  { %v2098_v37 = vpack.c.bf16 %v2034_v36, %v2034_v36  ;;  %1968 = vst.msk [vmem:[#allocation2 + $0x170] sm:$0xff] %vm23_vm0, %v1903_v35  ;;  %v141_v35 = vld [vmem:[#allocation2 + $0x1a0] sm:$0xff] }
 0x21e   :  { %v1645_v39 = vpop.f32.mrf.mxu2  ;;  %v1310_v42 = vpop.f32.mrf.mxu0 }
 0x21f   :  { %v1814_v40 = vpop.f32.mrf.mxu3  ;;  %2163 = vst.msk [vmem:[%s4329_s3 + $0xb4] sm:$0xf] %vm2117_vm1, %v2098_v37  ;;  %v1646_v41 = vadd.f32 %v1645_v39, %v1477_v38  ;;  %v1479_v43 = vpop.f32.mrf.mxu1 }
 0x220   :  { %v1480_v47 = vadd.f32 %v1479_v43, %v1310_v42 }
 0x221   :  { %v1815_v45 = vadd.f32 %v1814_v40, %v1646_v41 }
 0x223   :  { %v1904_v46 = vadd.f32 %v1815_v45, %v136_v44 }
 0x224   :  { %v2035_v48 = vld [vmem:[#allocation2 + $0x170] sm:$0xff] }
 0x225   :  { %v2099_v49 = vpack.c.bf16 %v2035_v48, %v2035_v48  ;;  %1969 = vst.msk [vmem:[#allocation2 + $0x178] sm:$0xff] %vm23_vm0, %v1904_v46  ;;  %v142_v46 = vld [vmem:[#allocation2 + $0x1a8] sm:$0xff] }
 0x226   :  { %v1648_v50 = vpop.f32.mrf.mxu2  ;;  %v1312_v54 = vpop.f32.mrf.mxu0 }
 0x227   :  { %v1817_v51 = vpop.f32.mrf.mxu3  ;;  %2164 = vst.msk [vmem:[%s4329_s3 + $0xb8] sm:$0xf] %vm2117_vm1, %v2099_v49  ;;  %v1649_v53 = vadd.f32 %v1648_v50, %v1480_v47  ;;  %v1481_v55 = vpop.f32.mrf.mxu1 }
 0x228   :  { %v1482_v61 = vadd.f32 %v1481_v55, %v1312_v54 }
 0x229   :  { %v1818_v57 = vadd.f32 %v1817_v51, %v1649_v53 }
 0x22b   :  { %v1905_v58 = vadd.f32 %v1818_v57, %v137_v56 }
 0x22c   :  { %v2036_v59 = vld [vmem:[#allocation2 + $0x178] sm:$0xff] }
 0x22d   :  { %v2100_v60 = vpack.c.bf16 %v2036_v59, %v2036_v59  ;;  %1970 = vst.msk [vmem:[#allocation2 + $0x180] sm:$0xff] %vm23_vm0, %v1905_v58  ;;  %v143_v58 = vld [vmem:[#allocation2 + $0x1b0] sm:$0xff] }
 0x22e   :  { %v1650_v62 = vpop.f32.mrf.mxu2  ;;  %v1315_v1 = vpop.f32.mrf.mxu0 }
 0x22f   :  { %v1819_v63 = vpop.f32.mrf.mxu3  ;;  %2165 = vst.msk [vmem:[%s4329_s3 + $0xbc] sm:$0xf] %vm2117_vm1, %v2100_v60  ;;  %v1651_v0 = vadd.f32 %v1650_v62, %v1482_v61  ;;  %v1484_v2 = vpop.f32.mrf.mxu1 }
 0x230   :  { %v1485_v6 = vadd.f32 %v1484_v2, %v1315_v1 }
 0x231   :  { %v1820_v4 = vadd.f32 %v1819_v63, %v1651_v0 }
 0x233   :  { %v1906_v5 = vadd.f32 %v1820_v4, %v138_v3 }
 0x234   :  { %v2037_v7 = vld [vmem:[#allocation2 + $0x180] sm:$0xff] }
 0x235   :  { %v2101_v8 = vpack.c.bf16 %v2037_v7, %v2037_v7  ;;  %1971 = vst.msk [vmem:[#allocation2 + $0x188] sm:$0xff] %vm23_vm0, %v1906_v5  ;;  %v144_v5 = vld [vmem:[#allocation2 + $0x1b8] sm:$0xff] }
 0x236   :  { %v1653_v9 = vpop.f32.mrf.mxu2  ;;  %v1317_v12 = vpop.f32.mrf.mxu0 }
 0x237   :  { %v1822_v10 = vpop.f32.mrf.mxu3  ;;  %2166 = vst.msk [vmem:[%s4329_s3 + $0xc0] sm:$0xf] %vm2117_vm1, %v2101_v8  ;;  %v1654_v11 = vadd.f32 %v1653_v9, %v1485_v6  ;;  %v1486_v13 = vpop.f32.mrf.mxu1 }
 0x238   :  { %v1487_v19 = vadd.f32 %v1486_v13, %v1317_v12 }
 0x239   :  { %v1823_v15 = vadd.f32 %v1822_v10, %v1654_v11 }
 0x23b   :  { %v1907_v16 = vadd.f32 %v1823_v15, %v139_v14 }
 0x23c   :  { %v2038_v17 = vld [vmem:[#allocation2 + $0x188] sm:$0xff] }
 0x23d   :  { %v2102_v18 = vpack.c.bf16 %v2038_v17, %v2038_v17  ;;  %1972 = vst.msk [vmem:[#allocation2 + $0x190] sm:$0xff] %vm23_vm0, %v1907_v16  ;;  %v145_v16 = vld [vmem:[#allocation2 + $0x1c0] sm:$0xff] }
 0x23e   :  { %v1655_v20 = vpop.f32.mrf.mxu2  ;;  %v1320_v52 = vpop.f32.mrf.mxu0 }
 0x23f   :  { %v1824_v21 = vpop.f32.mrf.mxu3  ;;  %2167 = vst.msk [vmem:[%s4329_s3 + $0xc4] sm:$0xf] %vm2117_vm1, %v2102_v18  ;;  %v1656_v22 = vadd.f32 %v1655_v20, %v1487_v19  ;;  %v1489_v23 = vpop.f32.mrf.mxu1 }
 0x240   :  { %v1490_v27 = vadd.f32 %v1489_v23, %v1320_v52 }
 0x241   :  { %v1825_v25 = vadd.f32 %v1824_v21, %v1656_v22 }
 0x243   :  { %v1908_v26 = vadd.f32 %v1825_v25, %v140_v24 }
 0x244   :  { %v2039_v28 = vld [vmem:[#allocation2 + $0x190] sm:$0xff] }
 0x245   :  { %v2103_v29 = vpack.c.bf16 %v2039_v28, %v2039_v28  ;;  %1973 = vst.msk [vmem:[#allocation2 + $0x198] sm:$0xff] %vm23_vm0, %v1908_v26  ;;  %v146_v26 = vld [vmem:[#allocation2 + $0x1c8] sm:$0xff] }
 0x246   :  { %v1658_v30 = vpop.f32.mrf.mxu2  ;;  %v1322_v33 = vpop.f32.mrf.mxu0 }
 0x247   :  { %v1827_v31 = vpop.f32.mrf.mxu3  ;;  %2168 = vst.msk [vmem:[%s4329_s3 + $0xc8] sm:$0xf] %vm2117_vm1, %v2103_v29  ;;  %v1659_v32 = vadd.f32 %v1658_v30, %v1490_v27  ;;  %v1491_v34 = vpop.f32.mrf.mxu1 }
 0x248   :  { %v1492_v40 = vadd.f32 %v1491_v34, %v1322_v33 }
 0x249   :  { %v1828_v36 = vadd.f32 %v1827_v31, %v1659_v32 }
 0x24b   :  { %v1909_v37 = vadd.f32 %v1828_v36, %v141_v35 }
 0x24c   :  { %v2040_v38 = vld [vmem:[#allocation2 + $0x198] sm:$0xff] }
 0x24d   :  { %v2104_v39 = vpack.c.bf16 %v2040_v38, %v2040_v38  ;;  %1974 = vst.msk [vmem:[#allocation2 + $0x1a0] sm:$0xff] %vm23_vm0, %v1909_v37  ;;  %v147_v37 = vld [vmem:[#allocation2 + $0x1d0] sm:$0xff] }
 0x24e   :  { %v1660_v41 = vpop.f32.mrf.mxu2  ;;  %v1325_v44 = vpop.f32.mrf.mxu0 }
 0x24f   :  { %v1829_v42 = vpop.f32.mrf.mxu3  ;;  %2169 = vst.msk [vmem:[%s4329_s3 + $0xcc] sm:$0xf] %vm2117_vm1, %v2104_v39  ;;  %v1661_v43 = vadd.f32 %v1660_v41, %v1492_v40  ;;  %v1494_v45 = vpop.f32.mrf.mxu1 }
 0x250   :  { %v1495_v49 = vadd.f32 %v1494_v45, %v1325_v44 }
 0x251   :  { %v1830_v47 = vadd.f32 %v1829_v42, %v1661_v43 }
 0x253   :  { %v1910_v48 = vadd.f32 %v1830_v47, %v142_v46 }
 0x254   :  { %v2041_v50 = vld [vmem:[#allocation2 + $0x1a0] sm:$0xff] }
 0x255   :  { %v2105_v51 = vpack.c.bf16 %v2041_v50, %v2041_v50  ;;  %1975 = vst.msk [vmem:[#allocation2 + $0x1a8] sm:$0xff] %vm23_vm0, %v1910_v48  ;;  %v148_v48 = vld [vmem:[#allocation2 + $0x1d8] sm:$0xff] }
 0x256   :  { %v1663_v53 = vpop.f32.mrf.mxu2  ;;  %v1327_v56 = vpop.f32.mrf.mxu0 }
 0x257   :  { %v1832_v54 = vpop.f32.mrf.mxu3  ;;  %2170 = vst.msk [vmem:[%s4329_s3 + $0xd0] sm:$0xf] %vm2117_vm1, %v2105_v51  ;;  %v1664_v55 = vadd.f32 %v1663_v53, %v1495_v49  ;;  %v1496_v57 = vpop.f32.mrf.mxu1 }
 0x258   :  { %v1497_v63 = vadd.f32 %v1496_v57, %v1327_v56 }
 0x259   :  { %v1833_v59 = vadd.f32 %v1832_v54, %v1664_v55 }
 0x25b   :  { %v1911_v60 = vadd.f32 %v1833_v59, %v143_v58 }
 0x25c   :  { %v2042_v61 = vld [vmem:[#allocation2 + $0x1a8] sm:$0xff] }
 0x25d   :  { %v2106_v62 = vpack.c.bf16 %v2042_v61, %v2042_v61  ;;  %1976 = vst.msk [vmem:[#allocation2 + $0x1b0] sm:$0xff] %vm23_vm0, %v1911_v60  ;;  %v149_v60 = vld [vmem:[#allocation2 + $0x1e0] sm:$0xff] }
 0x25e   :  { %v1665_v0 = vpop.f32.mrf.mxu2  ;;  %v1330_v3 = vpop.f32.mrf.mxu0 }
 0x25f   :  { %v1834_v1 = vpop.f32.mrf.mxu3  ;;  %2171 = vst.msk [vmem:[%s4329_s3 + $0xd4] sm:$0xf] %vm2117_vm1, %v2106_v62  ;;  %v1666_v2 = vadd.f32 %v1665_v0, %v1497_v63  ;;  %v1499_v4 = vpop.f32.mrf.mxu1 }
 0x260   :  { %v1500_v8 = vadd.f32 %v1499_v4, %v1330_v3 }
 0x261   :  { %v1835_v6 = vadd.f32 %v1834_v1, %v1666_v2 }
 0x263   :  { %v1912_v7 = vadd.f32 %v1835_v6, %v144_v5  ;;  %v150_v5 = vld [vmem:[#allocation2 + $0x1e8] sm:$0xff] }
 0x264   :  { %v2043_v9 = vld [vmem:[#allocation2 + $0x1b0] sm:$0xff] }
 0x265   :  { %v2107_v10 = vpack.c.bf16 %v2043_v9, %v2043_v9  ;;  %1977 = vst.msk [vmem:[#allocation2 + $0x1b8] sm:$0xff] %vm23_vm0, %v1912_v7 }
 0x266   :  { %v1668_v11 = vpop.f32.mrf.mxu2  ;;  %v1332_v14 = vpop.f32.mrf.mxu0 }
 0x267   :  { %v1837_v12 = vpop.f32.mrf.mxu3  ;;  %2172 = vst.msk [vmem:[%s4329_s3 + $0xd8] sm:$0xf] %vm2117_vm1, %v2107_v10  ;;  %v1669_v13 = vadd.f32 %v1668_v11, %v1500_v8  ;;  %v1501_v15 = vpop.f32.mrf.mxu1 }
 0x268   :  { %v1502_v21 = vadd.f32 %v1501_v15, %v1332_v14 }
 0x269   :  { %v1838_v17 = vadd.f32 %v1837_v12, %v1669_v13 }
 0x26b   :  { %v1913_v18 = vadd.f32 %v1838_v17, %v145_v16  ;;  %v151_v16 = vld [vmem:[#allocation2 + $0x1f0] sm:$0xff] }
 0x26c   :  { %v2044_v19 = vld [vmem:[#allocation2 + $0x1b8] sm:$0xff] }
 0x26d   :  { %v2108_v20 = vpack.c.bf16 %v2044_v19, %v2044_v19  ;;  %1978 = vst.msk [vmem:[#allocation2 + $0x1c0] sm:$0xff] %vm23_vm0, %v1913_v18 }
 0x26e   :  { %v1670_v22 = vpop.f32.mrf.mxu2  ;;  %v1335_v24 = vpop.f32.mrf.mxu0 }
 0x26f   :  { %v1839_v52 = vpop.f32.mrf.mxu3  ;;  %2173 = vst.msk [vmem:[%s4329_s3 + $0xdc] sm:$0xf] %vm2117_vm1, %v2108_v20  ;;  %v1671_v23 = vadd.f32 %v1670_v22, %v1502_v21  ;;  %v1504_v25 = vpop.f32.mrf.mxu1 }
 0x270   :  { %v1505_v29 = vadd.f32 %v1504_v25, %v1335_v24  ;;  %v152_v25 = vld [vmem:[#allocation2 + $0x1f8] sm:$0xff] }
 0x271   :  { %v1840_v27 = vadd.f32 %v1839_v52, %v1671_v23 }
 0x273   :  { %v1914_v28 = vadd.f32 %v1840_v27, %v146_v26 }
 0x274   :  { %v2045_v30 = vld [vmem:[#allocation2 + $0x1c0] sm:$0xff] }
 0x275   :  { %v2109_v31 = vpack.c.bf16 %v2045_v30, %v2045_v30  ;;  %1979 = vst.msk [vmem:[#allocation2 + $0x1c8] sm:$0xff] %vm23_vm0, %v1914_v28 }
 0x276   :  { %v1673_v32 = vpop.f32.mrf.mxu2  ;;  %v1337_v35 = vpop.f32.mrf.mxu0 }
 0x277   :  { %v1842_v33 = vpop.f32.mrf.mxu3  ;;  %2174 = vst.msk [vmem:[%s4329_s3 + $0xe0] sm:$0xf] %vm2117_vm1, %v2109_v31  ;;  %v1674_v34 = vadd.f32 %v1673_v32, %v1505_v29  ;;  %v1506_v36 = vpop.f32.mrf.mxu1 }
 0x278   :  { %v1507_v42 = vadd.f32 %v1506_v36, %v1337_v35 }
 0x279   :  { %v1843_v38 = vadd.f32 %v1842_v33, %v1674_v34 }
 0x27b   :  { %v1915_v39 = vadd.f32 %v1843_v38, %v147_v37 }
 0x27c   :  { %v2046_v40 = vld [vmem:[#allocation2 + $0x1c8] sm:$0xff] }
 0x27d   :  { %v2110_v41 = vpack.c.bf16 %v2046_v40, %v2046_v40  ;;  %1980 = vst.msk [vmem:[#allocation2 + $0x1d0] sm:$0xff] %vm23_vm0, %v1915_v39 }
 0x27e   :  { %v1675_v43 = vpop.f32.mrf.mxu2  ;;  %v1340_v46 = vpop.f32.mrf.mxu0 }
 0x27f   :  { %v1844_v44 = vpop.f32.mrf.mxu3  ;;  %2175 = vst.msk [vmem:[%s4329_s3 + $0xe4] sm:$0xf] %vm2117_vm1, %v2110_v41  ;;  %v1676_v45 = vadd.f32 %v1675_v43, %v1507_v42  ;;  %v1509_v47 = vpop.f32.mrf.mxu1 }
 0x280   :  { %v1510_v51 = vadd.f32 %v1509_v47, %v1340_v46 }
 0x281   :  { %v1845_v49 = vadd.f32 %v1844_v44, %v1676_v45 }
 0x283   :  { %v1916_v50 = vadd.f32 %v1845_v49, %v148_v48 }
 0x284   :  { %v2047_v53 = vld [vmem:[#allocation2 + $0x1d0] sm:$0xff] }
 0x285   :  { %v2111_v54 = vpack.c.bf16 %v2047_v53, %v2047_v53  ;;  %1981 = vst.msk [vmem:[#allocation2 + $0x1d8] sm:$0xff] %vm23_vm0, %v1916_v50 }
 0x286   :  { %v1678_v55 = vpop.f32.mrf.mxu2  ;;  %v1342_v58 = vpop.f32.mrf.mxu0 }
 0x287   :  { %v1847_v56 = vpop.f32.mrf.mxu3  ;;  %2176 = vst.msk [vmem:[%s4329_s3 + $0xe8] sm:$0xf] %vm2117_vm1, %v2111_v54  ;;  %v1679_v57 = vadd.f32 %v1678_v55, %v1510_v51  ;;  %v1511_v59 = vpop.f32.mrf.mxu1 }
 0x288   :  { %v1512_v1 = vadd.f32 %v1511_v59, %v1342_v58 }
 0x289   :  { %v1848_v61 = vadd.f32 %v1847_v56, %v1679_v57 }
 0x28b   :  { %v1917_v62 = vadd.f32 %v1848_v61, %v149_v60 }
 0x28c   :  { %v2048_v63 = vld [vmem:[#allocation2 + $0x1d8] sm:$0xff] }
 0x28d   :  { %v2112_v0 = vpack.c.bf16 %v2048_v63, %v2048_v63  ;;  %1982 = vst.msk [vmem:[#allocation2 + $0x1e0] sm:$0xff] %vm23_vm0, %v1917_v62 }
 0x28e   :  { %v1680_v2 = vpop.f32.mrf.mxu2  ;;  %v1345_v6 = vpop.f32.mrf.mxu0 }
 0x28f   :  { %v1849_v3 = vpop.f32.mrf.mxu3  ;;  %2177 = vst.msk [vmem:[%s4329_s3 + $0xec] sm:$0xf] %vm2117_vm1, %v2112_v0  ;;  %v1681_v4 = vadd.f32 %v1680_v2, %v1512_v1  ;;  %v1514_v7 = vpop.f32.mrf.mxu1 }
 0x290   :  { %v1515_v10 = vadd.f32 %v1514_v7, %v1345_v6 }
 0x291   :  { %v1850_v8 = vadd.f32 %v1849_v3, %v1681_v4 }
 0x293   :  { %v1918_v9 = vadd.f32 %v1850_v8, %v150_v5 }
 0x294   :  { %v2049_v11 = vld [vmem:[#allocation2 + $0x1e0] sm:$0xff] }
 0x295   :  { %v2113_v12 = vpack.c.bf16 %v2049_v11, %v2049_v11  ;;  %1983 = vst.msk [vmem:[#allocation2 + $0x1e8] sm:$0xff] %vm23_vm0, %v1918_v9 }
 0x296   :  { %v1683_v13 = vpop.f32.mrf.mxu2  ;;  %v1347_v18 = vpop.f32.mrf.mxu0 }
 0x297   :  { %v1852_v14 = vpop.f32.mrf.mxu3  ;;  %2178 = vst.msk [vmem:[%s4329_s3 + $0xf0] sm:$0xf] %vm2117_vm1, %v2113_v12  ;;  %v1684_v15 = vadd.f32 %v1683_v13, %v1515_v10  ;;  %v1516_v19 = vpop.f32.mrf.mxu1 }
 0x298   :  { %v1517_v52 = vadd.f32 %v1516_v19, %v1347_v18 }
 0x299   :  { %v1853_v17 = vadd.f32 %v1852_v14, %v1684_v15 }
 0x29b   :  { %v1919_v20 = vadd.f32 %v1853_v17, %v151_v16 }
 0x29c   :  { %v2050_v21 = vld [vmem:[#allocation2 + $0x1e8] sm:$0xff] }
 0x29d   :  { %v2114_v22 = vpack.c.bf16 %v2050_v21, %v2050_v21  ;;  %1984 = vst.msk [vmem:[#allocation2 + $0x1f0] sm:$0xff] %vm23_vm0, %v1919_v20 }
 0x29e   :  { %v1685_v23 = vpop.f32.mrf.mxu2 }
 0x29f   :  { %2179 = vst.msk [vmem:[%s4329_s3 + $0xf4] sm:$0xf] %vm2117_vm1, %v2114_v22  ;;  %v1686_v24 = vadd.f32 %v1685_v23, %v1517_v52  ;;  %v1854_v26 = vpop.f32.mrf.mxu3 }
 0x2a1   :  { %v1855_v27 = vadd.f32 %v1854_v26, %v1686_v24 }
 0x2a3   :  { %v1920_v28 = vadd.f32 %v1855_v27, %v152_v25 }
 0x2a4   :  { %v2051_v29 = vld [vmem:[#allocation2 + $0x1f0] sm:$0xff] }
 0x2a5   :  { %v2115_v30 = vpack.c.bf16 %v2051_v29, %v2051_v29  ;;  %1985 = vst.msk [vmem:[#allocation2 + $0x1f8] sm:$0xff] %vm23_vm0, %v1920_v28 }
 0x2a7   :  { %2180 = vst.msk [vmem:[%s4329_s3 + $0xf8] sm:$0xf] %vm2117_vm1, %v2115_v30 }
 0x2ac   :  { %v2052_v31 = vld [vmem:[#allocation2 + $0x1f8] sm:$0xff] }
 0x2ad   :  { %v2116_v32 = vpack.c.bf16 %v2052_v31, %v2052_v31 }
 0x2af   :  { %2181 = vst.msk [vmem:[%s4329_s3 + $0xfc] sm:$0xf] %vm2117_vm1, %v2116_v32 }

</bundles_post_ra>
